<compile_context>
chip_gen: v7x
topology: tpu7x:2x2x1
jax: 0.10.0
libtpu: 0.0.40
codegen_flags: <defaults>
</compile_context>

<pallas_src>
import functools
import math

import jax
import jax.numpy as jnp
from jax import lax
from jax.experimental import pallas as pl
from jax.experimental.pallas import tpu as pltpu


# ---------------------------------------------------------------------------
# Kernel A: LayerNorm1 + fused QKV projection (one wide bf16 MXU matmul).
# ---------------------------------------------------------------------------
def _qkv_kernel(eps, d_model,
                x_ref,                     # (1, TS, D)  f32
                g1_ref, b1_ref,            # (1, D)      f32
                wqkv_ref,                  # (D, 3D)     bf16 (q columns pre-scaled)
                bqkv_ref,                  # (1, 3D)     f32  (q part pre-scaled)
                q_ref, k_ref, v_ref):      # (1, TS, D)  bf16 each (lane-dense)
    x = x_ref[0]                                            # (TS, D) f32
    mu = jnp.mean(x, axis=-1, keepdims=True)
    var = jnp.mean((x - mu) ** 2, axis=-1, keepdims=True)
    xn = (x - mu) * lax.rsqrt(var + eps) * g1_ref[0] + b1_ref[0]
    # One (TS, D) x (D, 3D) matmul fills the MXU instead of 3*nhead narrow ones.
    qkv = (jnp.dot(xn.astype(jnp.bfloat16), wqkv_ref[...],
                   preferred_element_type=jnp.float32) + bqkv_ref[0])
    qkv = qkv.astype(jnp.bfloat16)                          # (TS, 3D)
    # Lane-dense stores: last dim is D (slices at D are lane-aligned for D % 128 == 0).
    q_ref[0] = qkv[:, :d_model]
    k_ref[0] = qkv[:, d_model:2 * d_model]
    v_ref[0] = qkv[:, 2 * d_model:]


# ---------------------------------------------------------------------------
# Kernel B: flash attention over kv tiles + fused out-proj + LN2 + FFN.
# ---------------------------------------------------------------------------
def _attn_ffn_kernel(eps, nhead, hd,
                     x_ref,                   # (1, TQ, D)  f32  residual tile
                     q_ref,                   # (1, TQ, D)  bf16 (already scaled)
                     k_ref, v_ref,            # (1, TKV, D) bf16 kv tile
                     wo_ref, bo_ref,          # (D, D) bf16 / (1, D) f32
                     g2_ref, b2_ref,          # (1, D) f32
                     w1_ref, bb1_ref,         # (D, F) bf16 / (1, F) f32
                     w2_ref, bb2_ref,         # (F, D) bf16 / (1, D) f32
                     out_ref,                 # (1, TQ, D)  f32
                     m_scr, l_scr,            # (nhead, TQ, 1)  f32
                     acc_scr):                # (nhead, TQ, hd) f32
    kv = pl.program_id(2)
    nkv = pl.num_programs(2)

    @pl.when(kv == 0)
    def _init():
        m_scr[...] = jnp.full_like(m_scr, -jnp.inf)
        l_scr[...] = jnp.zeros_like(l_scr)
        acc_scr[...] = jnp.zeros_like(acc_scr)

    q = q_ref[0]                              # (TQ,  D) bf16
    k = k_ref[0]                              # (TKV, D) bf16
    v = v_ref[0]                              # (TKV, D) bf16

    # Static unroll over heads: per-head working set is bounded by the (TQ, TKV)
    # kv tile; per-head q/k/v are static lane slices (aligned when hd % 128 == 0).
    for h in range(nhead):
        qh = q[:, h * hd:(h + 1) * hd]
        kh = k[:, h * hd:(h + 1) * hd]
        vh = v[:, h * hd:(h + 1) * hd]
        # Contract the head dim of BOTH operands -> no K transpose in VMEM.
        s = lax.dot_general(qh, kh, (((1,), (1,)), ((), ())),
                            preferred_element_type=jnp.float32)        # (TQ, TKV)
        m_prev = m_scr[h]
        m_new = jnp.maximum(m_prev, jnp.max(s, axis=-1, keepdims=True))
        alpha = jnp.exp(m_prev - m_new)
        p = jnp.exp(s - m_new)
        # TODO(synk): compute p in bf16 on v6e/v7x if profiling shows the EUP is the
        #             binding unit (v5e has no bf16 EUP path).
        l_scr[h] = alpha * l_scr[h] + jnp.sum(p, axis=-1, keepdims=True)
        acc_scr[h] = alpha * acc_scr[h] + jnp.dot(
            p.astype(jnp.bfloat16), vh, preferred_element_type=jnp.float32)
        m_scr[h] = m_new

    @pl.when(kv == nkv - 1)
    def _finalize():
        # Normalize heads, concatenate on the lane axis, then ONE (TQ,D)x(D,D)
        # out-projection so the MXU runs at full contraction depth (K = D).
        heads = []
        for h in range(nhead):
            inv_l = pl.reciprocal(l_scr[h], approx=True)                # EUP reciprocal
            heads.append((acc_scr[h] * inv_l).astype(jnp.bfloat16))
        attn = jnp.concatenate(heads, axis=-1)                          # (TQ, D) bf16
        x = x_ref[0]                                                    # (TQ, D) f32
        x1 = x + jnp.dot(attn, wo_ref[...],
                         preferred_element_type=jnp.float32) + bo_ref[0]

        mu = jnp.mean(x1, axis=-1, keepdims=True)
        var = jnp.mean((x1 - mu) ** 2, axis=-1, keepdims=True)
        xn2 = (x1 - mu) * lax.rsqrt(var + eps) * g2_ref[0] + b2_ref[0]

        hdn = jnp.dot(xn2.astype(jnp.bfloat16), w1_ref[...],
                      preferred_element_type=jnp.float32) + bb1_ref[0]
        act = jax.nn.gelu(hdn, approximate=False)   # exact GELU == nn.GELU default
        ff = jnp.dot(act.astype(jnp.bfloat16), w2_ref[...],
                     preferred_element_type=jnp.float32) + bb2_ref[0]
        out_ref[0] = x1 + ff


# ---------------------------------------------------------------------------
# Host-side helpers
# ---------------------------------------------------------------------------
def _tpu_vmem_bytes():
    try:
        return int(pltpu.get_tpu_info().vmem_capacity_bytes)
    except Exception:
        return 64 * 1024 * 1024          # conservative (v7x-sized) fallback


def _choose_tiles(S, D, F, nhead, budget_bytes, max_tile):
    """Pick (TQ, TKV) so Kernel B's estimated VMEM footprint fits the budget."""
    hd = D // nhead
    cands = [t for t in (512, 256, 128) if t <= max_tile and S % t == 0] or [S]

    def fits(tq, tkv):
        stream = 2 * (tq * D * 4           # x residual tile (f32, double-buffered)
                      + tq * D * 2         # q tile (bf16)
                      + 2 * tkv * D * 2    # k + v kv tiles (bf16)
                      + tq * D * 4)        # output tile (f32)
        weights = (3 * D * D * 2 + D * D * 2 + 2 * D * F * 2    # wqkv/wo/w1/w2 (bf16)
                   + (9 * D + F) * 4)                           # biases / gammas (f32)
        interm = tq * tkv * 6 + tq * F * 4 + tq * D * 8         # scores+p, ffn act, x1
        scratch = nhead * tq * (hd + 2 * 128) * 4               # m/l (lane pad) + acc
        return stream + weights + interm + scratch <= budget_bytes

    for tq in cands:
        for tkv in cands:
            if fits(tq, tkv):
                return tq, tkv
    return cands[-1], cands[-1]


def _prepare_kernel_params(params, nhead):
    """One-time reorganization: fused bf16 weights, q projection pre-scaled."""
    D = params["wo_t"].shape[0]
    hd = D // nhead
    scale = 1.0 / math.sqrt(hd)
    col_scale = jnp.concatenate([jnp.full((D,), scale, jnp.float32),
                                 jnp.ones((2 * D,), jnp.float32)])[None, :]
    return dict(
        g1=params["g1"], b1=params["b1"], g2=params["g2"], b2=params["b2"],
        wqkv=(params["wqkv_t"] * col_scale).astype(jnp.bfloat16),      # (D, 3D)
        bqkv=params["bqkv"] * col_scale,                               # (1, 3D)
        wo=params["wo_t"].astype(jnp.bfloat16), bo=params["bo"],
        w1=params["w1_t"].astype(jnp.bfloat16), bb1=params["bb1"],
        w2=params["w2_t"].astype(jnp.bfloat16), bb2=params["bb2"],
    )


def _forward(x, params, nhead, eps, single_buffer_weights):
    B, S, D = x.shape
    assert D % nhead == 0
    hd = D // nhead
    kp = _prepare_kernel_params(params, nhead)
    F = kp["w1"].shape[-1]

    phys_vmem = _tpu_vmem_bytes()
    budget = (phys_vmem * 3) // 4        # headroom for internal scratch / spills
    max_tile = 256 if phys_vmem <= 64 * 1024 * 1024 else 512   # v7x vs v5e/v6e
    TQ, TKV = _choose_tiles(S, D, F, nhead, budget, max_tile)
    nq, nkv = S // TQ, S // TKV

    def const_spec(shape):
        n = len(shape)
        idx = lambda *args, _n=n: (0,) * _n
        if single_buffer_weights:
            # Grid-invariant block: a second pipeline buffer would be pure VMEM waste.
            return pl.BlockSpec(shape, idx, pipeline_mode=pl.Buffered(1))
        return pl.BlockSpec(shape, idx)

    # ---- Kernel A: LN1 + fused QKV projection, tiled over (batch, seq) ----
    q, k, v = pl.pallas_call(
        functools.partial(_qkv_kernel, eps, D),
        out_shape=tuple(jax.ShapeDtypeStruct((B, S, D), jnp.bfloat16)
                        for _ in range(3)),
        grid=(B, nq),
        in_specs=[
            pl.BlockSpec((1, TQ, D), lambda b, i: (b, i, 0)),            # x tile
            const_spec((1, D)), const_spec((1, D)),                      # ln1 g/b
            const_spec((D, 3 * D)), const_spec((1, 3 * D)),              # wqkv, bqkv
        ],
        out_specs=tuple(pl.BlockSpec((1, TQ, D), lambda b, i: (b, i, 0))
                        for _ in range(3)),
        compiler_params=pltpu.CompilerParams(
            dimension_semantics=("parallel", "parallel"),
            vmem_limit_bytes=budget),
    )(x, kp["g1"], kp["b1"], kp["wqkv"], kp["bqkv"])

    # ---- Kernel B: flash attention over kv tiles + out-proj + LN2 + FFN ----
    out = pl.pallas_call(
        functools.partial(_attn_ffn_kernel, eps, nhead, hd),
        out_shape=jax.ShapeDtypeStruct((B, S, D), jnp.float32),
        grid=(B, nq, nkv),
        in_specs=[
            pl.BlockSpec((1, TQ, D), lambda b, i, j: (b, i, 0)),         # x residual
            pl.BlockSpec((1, TQ, D), lambda b, i, j: (b, i, 0)),         # q tile
            pl.BlockSpec((1, TKV, D), lambda b, i, j: (b, j, 0)),        # k kv tile
            pl.BlockSpec((1, TKV, D), lambda b, i, j: (b, j, 0)),        # v kv tile
            const_spec((D, D)), const_spec((1, D)),                      # out proj
            const_spec((1, D)), const_spec((1, D)),                      # ln2 g/b
            const_spec((D, F)), const_spec((1, F)),                      # linear1
            const_spec((F, D)), const_spec((1, D)),                      # linear2
        ],
        out_specs=pl.BlockSpec((1, TQ, D), lambda b, i, j: (b, i, 0)),
        scratch_shapes=[
            pltpu.VMEM((nhead, TQ, 1), jnp.float32),    # running max
            pltpu.VMEM((nhead, TQ, 1), jnp.float32),    # running denominator
            pltpu.VMEM((nhead, TQ, hd), jnp.float32),   # running weighted value sum
        ],
        compiler_params=pltpu.CompilerParams(
            dimension_semantics=("parallel", "parallel", "arbitrary"),
            vmem_limit_bytes=budget),
    )(x, q, k, v, kp["wo"], kp["bo"], kp["g2"], kp["b2"],
      kp["w1"], kp["bb1"], kp["w2"], kp["bb2"])
    return out


def custom_decoder_layer(x, params, nhead, eps=1e-5):
    try:
        return _forward(x, params, nhead, eps, single_buffer_weights=True)
    except Exception:
        # pl.Buffered(1) (single-buffered constant blocks) not supported by this
        # JAX/Mosaic version -> retry with default double buffering.
        return _forward(x, params, nhead, eps, single_buffer_weights=False)


# ---------------------------------------------------------------------------
# Plain-JAX reference (f32) for sanity checking.
# ---------------------------------------------------------------------------
def _reference(x, params, nhead, eps=1e-5):
    B, S, D = x.shape
    hd = D // nhead

    def ln(v, g, b):
        mu = v.mean(-1, keepdims=True)
        var = ((v - mu) ** 2).mean(-1, keepdims=True)
        return (v - mu) / jnp.sqrt(var + eps) * g + b

    xn = ln(x, params["g1"][0], params["b1"][0])
    qkv = xn @ params["wqkv_t"] + params["bqkv"][0]
    q, k, v = jnp.split(qkv, 3, axis=-1)
    q = q.reshape(B, S, nhead, hd).transpose(0, 2, 1, 3) / math.sqrt(hd)
    k = k.reshape(B, S, nhead, hd).transpose(0, 2, 1, 3)
    v = v.reshape(B, S, nhead, hd).transpose(0, 2, 1, 3)
    s = jnp.einsum("bhqd,bhkd->bhqk", q, k)
    p = jax.nn.softmax(s, axis=-1)
    a = jnp.einsum("bhqk,bhkd->bhqd", p, v).transpose(0, 2, 1, 3).reshape(B, S, D)
    a = a @ params["wo_t"] + params["bo"][0]
    x1 = x + a
    xn2 = ln(x1, params["g2"][0], params["b2"][0])
    h = jax.nn.gelu(xn2 @ params["w1_t"] + params["bb1"][0], approximate=False)
    return x1 + (h @ params["w2_t"] + params["bb2"][0])


def init_params(key, d_model, d_ff):
    ks = jax.random.split(key, 8)
    sc = 0.02
    return {
        "g1": jnp.ones((1, d_model), jnp.float32),
        "b1": jnp.zeros((1, d_model), jnp.float32),
        # stored pre-transposed: x @ W^T == x @ W_t
        "wqkv_t": sc * jax.random.normal(ks[0], (d_model, 3 * d_model), jnp.float32),
        "bqkv": sc * jax.random.normal(ks[1], (1, 3 * d_model), jnp.float32),
        "wo_t": sc * jax.random.normal(ks[2], (d_model, d_model), jnp.float32),
        "bo": sc * jax.random.normal(ks[3], (1, d_model), jnp.float32),
        "g2": jnp.ones((1, d_model), jnp.float32),
        "b2": jnp.zeros((1, d_model), jnp.float32),
        "w1_t": sc * jax.random.normal(ks[4], (d_model, d_ff), jnp.float32),
        "bb1": sc * jax.random.normal(ks[5], (1, d_ff), jnp.float32),
        "w2_t": sc * jax.random.normal(ks[6], (d_ff, d_model), jnp.float32),
        "bb2": sc * jax.random.normal(ks[7], (1, d_model), jnp.float32),
    }


if __name__ == "__main__":
    key = jax.random.PRNGKey(0)

    def run_case(case_key, B, S, D, NHEAD, D_FF):
        kx, kparams = jax.random.split(case_key)
        x = jax.random.normal(kx, (B, S, D), jnp.float32)
        params = init_params(kparams, D, D_FF)
        out = jax.block_until_ready(custom_decoder_layer(x, params, NHEAD))
        ref = _reference(x, params, NHEAD)
        assert out.shape == (B, S, D)
        # bf16 MXU matmuls + approx reciprocal -> looser tolerance than pure f32.
        assert jnp.allclose(out, ref, atol=2e-2, rtol=2e-2), "mismatch vs reference"

    k1, k2 = jax.random.split(key)
    # Small smoke shape (lane-aligned heads: hd = 128).
    run_case(k1, B=2, S=16, D=256, NHEAD=2, D_FF=512)
    # Multi-tile shape: exercises seq tiling and the online-softmax kv-tile loop.
    run_case(k2, B=1, S=1024, D=256, NHEAD=2, D_FF=512)

    print("KERNEL_OK")
</pallas_src>

<mosaic_0001>
module attributes {stable_mosaic.version = 11 : i64} {
  func.func @_qkv_kernel(%arg0: i32, %arg1: i32, %arg2: memref<1x16x256xf32, #tpu.memory_space<vmem>>, %arg3: memref<1x256xf32, #tpu.memory_space<vmem>>, %arg4: memref<1x256xf32, #tpu.memory_space<vmem>>, %arg5: memref<256x768xbf16, #tpu.memory_space<vmem>>, %arg6: memref<1x768xf32, #tpu.memory_space<vmem>>, %arg7: memref<1x16x256xbf16, #tpu.memory_space<vmem>>, %arg8: memref<1x16x256xbf16, #tpu.memory_space<vmem>>, %arg9: memref<1x16x256xbf16, #tpu.memory_space<vmem>>) attributes {dimension_semantics = [#tpu.dimension_semantics<parallel>, #tpu.dimension_semantics<parallel>], iteration_bounds = array<i64: 2, 1>, scalar_prefetch = 0 : i64, scratch_operands = 0 : i64, tpu.core_type = #tpu.core_type<tc>, window_params = [{transform_indices = @transform_0, window_bounds = array<i64: 1, 16, 256>}, {pipeline_mode = #tpu.pipeline_mode<synchronous>, transform_indices = @transform_1, window_bounds = array<i64: 1, 256>}, {pipeline_mode = #tpu.pipeline_mode<synchronous>, transform_indices = @transform_2, window_bounds = array<i64: 1, 256>}, {pipeline_mode = #tpu.pipeline_mode<synchronous>, transform_indices = @transform_3, window_bounds = array<i64: 256, 768>}, {pipeline_mode = #tpu.pipeline_mode<synchronous>, transform_indices = @transform_4, window_bounds = array<i64: 1, 768>}, {transform_indices = @transform_5, window_bounds = array<i64: 1, 16, 256>}, {transform_indices = @transform_6, window_bounds = array<i64: 1, 16, 256>}, {transform_indices = @transform_7, window_bounds = array<i64: 1, 16, 256>}]} {
    %c0 = arith.constant 0 : index
    %c0_0 = arith.constant 0 : index
    %c0_1 = arith.constant 0 : index
    %0 = vector.load %arg2[%c0, %c0_0, %c0_1] : memref<1x16x256xf32, #tpu.memory_space<vmem>>, vector<1x16x256xf32>
    %1 = vector.shape_cast %0 : vector<1x16x256xf32> to vector<16x256xf32>
    %cst = arith.constant dense<0.000000e+00> : vector<16xf32>
    %2 = vector.multi_reduction <add>, %1, %cst [1] : vector<16x256xf32> to vector<16xf32>
    %3 = vector.shape_cast %2 : vector<16xf32> to vector<16x1xf32>
    %cst_2 = arith.constant 2.560000e+02 : f32
    %4 = vector.broadcast %cst_2 : f32 to vector<16x1xf32>
    %5 = arith.divf %3, %4 : vector<16x1xf32>
    %6 = vector.broadcast %5 : vector<16x1xf32> to vector<16x256xf32>
    %7 = arith.subf %1, %6 : vector<16x256xf32>
    %8 = arith.mulf %7, %7 : vector<16x256xf32>
    %cst_3 = arith.constant dense<0.000000e+00> : vector<16xf32>
    %9 = vector.multi_reduction <add>, %8, %cst_3 [1] : vector<16x256xf32> to vector<16xf32>
    %10 = vector.shape_cast %9 : vector<16xf32> to vector<16x1xf32>
    %cst_4 = arith.constant 2.560000e+02 : f32
    %11 = vector.broadcast %cst_4 : f32 to vector<16x1xf32>
    %12 = arith.divf %10, %11 : vector<16x1xf32>
    %13 = vector.broadcast %5 : vector<16x1xf32> to vector<16x256xf32>
    %14 = arith.subf %1, %13 : vector<16x256xf32>
    %cst_5 = arith.constant 9.99999974E-6 : f32
    %15 = vector.broadcast %cst_5 : f32 to vector<16x1xf32>
    %16 = arith.addf %12, %15 : vector<16x1xf32>
    %17 = math.rsqrt %16 : vector<16x1xf32>
    %18 = vector.broadcast %17 : vector<16x1xf32> to vector<16x256xf32>
    %19 = arith.mulf %14, %18 : vector<16x256xf32>
    %c0_6 = arith.constant 0 : index
    %c0_7 = arith.constant 0 : index
    %20 = vector.load %arg3[%c0_6, %c0_7] : memref<1x256xf32, #tpu.memory_space<vmem>>, vector<1x256xf32>
    %21 = vector.shape_cast %20 : vector<1x256xf32> to vector<256xf32>
    %22 = vector.shape_cast %21 : vector<256xf32> to vector<1x256xf32>
    %23 = vector.broadcast %22 : vector<1x256xf32> to vector<16x256xf32>
    %24 = arith.mulf %19, %23 : vector<16x256xf32>
    %c0_8 = arith.constant 0 : index
    %c0_9 = arith.constant 0 : index
    %25 = vector.load %arg4[%c0_8, %c0_9] : memref<1x256xf32, #tpu.memory_space<vmem>>, vector<1x256xf32>
    %26 = vector.shape_cast %25 : vector<1x256xf32> to vector<256xf32>
    %27 = vector.shape_cast %26 : vector<256xf32> to vector<1x256xf32>
    %28 = vector.broadcast %27 : vector<1x256xf32> to vector<16x256xf32>
    %29 = arith.addf %24, %28 : vector<16x256xf32>
    %30 = arith.truncf %29 : vector<16x256xf32> to vector<16x256xbf16>
    %c0_10 = arith.constant 0 : index
    %c0_11 = arith.constant 0 : index
    %31 = vector.load %arg5[%c0_10, %c0_11] : memref<256x768xbf16, #tpu.memory_space<vmem>>, vector<256x768xbf16>
    %cst_12 = arith.constant dense<0.000000e+00> : vector<16x768xf32>
    %32 = tpu.matmul %30, %31, %cst_12 {dimension_numbers = #tpu.dot_dimension_numbers<[1], [0], [0], [1], [0, 0, 1, 1], [], []>} : vector<16x256xbf16>, vector<256x768xbf16>, vector<16x768xf32> -> vector<16x768xf32>
    %c0_13 = arith.constant 0 : index
    %c0_14 = arith.constant 0 : index
    %33 = vector.load %arg6[%c0_13, %c0_14] : memref<1x768xf32, #tpu.memory_space<vmem>>, vector<1x768xf32>
    %34 = vector.shape_cast %33 : vector<1x768xf32> to vector<768xf32>
    %35 = vector.shape_cast %34 : vector<768xf32> to vector<1x768xf32>
    %36 = vector.broadcast %35 : vector<1x768xf32> to vector<16x768xf32>
    %37 = arith.addf %32, %36 : vector<16x768xf32>
    %38 = arith.truncf %37 : vector<16x768xf32> to vector<16x768xbf16>
    %39 = vector.extract_strided_slice %38 {offsets = [0, 0], sizes = [16, 256], strides = [1, 1]} : vector<16x768xbf16> to vector<16x256xbf16>
    %c0_15 = arith.constant 0 : index
    %c0_16 = arith.constant 0 : index
    %c0_17 = arith.constant 0 : index
    %40 = vector.load %arg7[%c0_15, %c0_16, %c0_17] : memref<1x16x256xbf16, #tpu.memory_space<vmem>>, vector<1x16x256xbf16>
    %41 = vector.shape_cast %40 : vector<1x16x256xbf16> to vector<16x256xbf16>
    %42 = vector.shape_cast %39 : vector<16x256xbf16> to vector<1x16x256xbf16>
    tpu.vector_store %arg7[%c0_15, %c0_16, %c0_17], %42 {strides = array<i32>} : memref<1x16x256xbf16, #tpu.memory_space<vmem>>, vector<1x16x256xbf16>,
    %43 = vector.extract_strided_slice %38 {offsets = [0, 256], sizes = [16, 256], strides = [1, 1]} : vector<16x768xbf16> to vector<16x256xbf16>
    %c0_18 = arith.constant 0 : index
    %c0_19 = arith.constant 0 : index
    %c0_20 = arith.constant 0 : index
    %44 = vector.load %arg8[%c0_18, %c0_19, %c0_20] : memref<1x16x256xbf16, #tpu.memory_space<vmem>>, vector<1x16x256xbf16>
    %45 = vector.shape_cast %44 : vector<1x16x256xbf16> to vector<16x256xbf16>
    %46 = vector.shape_cast %43 : vector<16x256xbf16> to vector<1x16x256xbf16>
    tpu.vector_store %arg8[%c0_18, %c0_19, %c0_20], %46 {strides = array<i32>} : memref<1x16x256xbf16, #tpu.memory_space<vmem>>, vector<1x16x256xbf16>,
    %47 = vector.extract_strided_slice %38 {offsets = [0, 512], sizes = [16, 256], strides = [1, 1]} : vector<16x768xbf16> to vector<16x256xbf16>
    %c0_21 = arith.constant 0 : index
    %c0_22 = arith.constant 0 : index
    %c0_23 = arith.constant 0 : index
    %48 = vector.load %arg9[%c0_21, %c0_22, %c0_23] : memref<1x16x256xbf16, #tpu.memory_space<vmem>>, vector<1x16x256xbf16>
    %49 = vector.shape_cast %48 : vector<1x16x256xbf16> to vector<16x256xbf16>
    %50 = vector.shape_cast %47 : vector<16x256xbf16> to vector<1x16x256xbf16>
    tpu.vector_store %arg9[%c0_21, %c0_22, %c0_23], %50 {strides = array<i32>} : memref<1x16x256xbf16, #tpu.memory_space<vmem>>, vector<1x16x256xbf16>,
    return
  }
  func.func @transform_0(%arg0: i32, %arg1: i32) -> (i32, i32, i32) {
    %c0_i32 = arith.constant 0 : i32
    %c0_i32_0 = arith.constant 0 : i32
    return %arg0, %arg1, %c0_i32 : i32, i32, i32
  }
  func.func @transform_1(%arg0: i32, %arg1: i32) -> (i32, i32) {
    %c0_i32 = arith.constant 0 : i32
    %c0_i32_0 = arith.constant 0 : i32
    %c0_i32_1 = arith.constant 0 : i32
    return %c0_i32, %c0_i32_0 : i32, i32
  }
  func.func @transform_2(%arg0: i32, %arg1: i32) -> (i32, i32) {
    %c0_i32 = arith.constant 0 : i32
    %c0_i32_0 = arith.constant 0 : i32
    %c0_i32_1 = arith.constant 0 : i32
    return %c0_i32, %c0_i32_0 : i32, i32
  }
  func.func @transform_3(%arg0: i32, %arg1: i32) -> (i32, i32) {
    %c0_i32 = arith.constant 0 : i32
    %c0_i32_0 = arith.constant 0 : i32
    %c0_i32_1 = arith.constant 0 : i32
    return %c0_i32, %c0_i32_0 : i32, i32
  }
  func.func @transform_4(%arg0: i32, %arg1: i32) -> (i32, i32) {
    %c0_i32 = arith.constant 0 : i32
    %c0_i32_0 = arith.constant 0 : i32
    %c0_i32_1 = arith.constant 0 : i32
    return %c0_i32, %c0_i32_0 : i32, i32
  }
  func.func @transform_5(%arg0: i32, %arg1: i32) -> (i32, i32, i32) {
    %c0_i32 = arith.constant 0 : i32
    %c0_i32_0 = arith.constant 0 : i32
    return %arg0, %arg1, %c0_i32 : i32, i32, i32
  }
  func.func @transform_6(%arg0: i32, %arg1: i32) -> (i32, i32, i32) {
    %c0_i32 = arith.constant 0 : i32
    %c0_i32_0 = arith.constant 0 : i32
    return %arg0, %arg1, %c0_i32 : i32, i32, i32
  }
  func.func @transform_7(%arg0: i32, %arg1: i32) -> (i32, i32, i32) {
    %c0_i32 = arith.constant 0 : i32
    %c0_i32_0 = arith.constant 0 : i32
    return %arg0, %arg1, %c0_i32 : i32, i32, i32
  }
}

module attributes {stable_mosaic.version = 11 : i64} {
  func.func @_qkv_kernel(%arg0: i32, %arg1: i32, %arg2: memref<1x16x256xf32, #tpu.memory_space<vmem>>, %arg3: memref<1x256xf32, #tpu.memory_space<vmem>>, %arg4: memref<1x256xf32, #tpu.memory_space<vmem>>, %arg5: memref<256x768xbf16, #tpu.memory_space<vmem>>, %arg6: memref<1x768xf32, #tpu.memory_space<vmem>>, %arg7: memref<1x16x256xbf16, #tpu.memory_space<vmem>>, %arg8: memref<1x16x256xbf16, #tpu.memory_space<vmem>>, %arg9: memref<1x16x256xbf16, #tpu.memory_space<vmem>>) attributes {dimension_semantics = [#tpu.dimension_semantics<parallel>, #tpu.dimension_semantics<parallel>], iteration_bounds = array<i64: 2, 1>, scalar_prefetch = 0 : i64, scratch_operands = 0 : i64, tpu.core_type = #tpu.core_type<tc>, window_params = [{transform_indices = @transform_0, window_bounds = array<i64: 1, 16, 256>}, {pipeline_mode = #tpu.pipeline_mode<synchronous>, transform_indices = @transform_1, window_bounds = array<i64: 1, 256>}, {pipeline_mode = #tpu.pipeline_mode<synchronous>, transform_indices = @transform_2, window_bounds = array<i64: 1, 256>}, {pipeline_mode = #tpu.pipeline_mode<synchronous>, transform_indices = @transform_3, window_bounds = array<i64: 256, 768>}, {pipeline_mode = #tpu.pipeline_mode<synchronous>, transform_indices = @transform_4, window_bounds = array<i64: 1, 768>}, {transform_indices = @transform_5, window_bounds = array<i64: 1, 16, 256>}, {transform_indices = @transform_6, window_bounds = array<i64: 1, 16, 256>}, {transform_indices = @transform_7, window_bounds = array<i64: 1, 16, 256>}]} {
    %c0 = arith.constant 0 : index
    %c0_0 = arith.constant 0 : index
    %c0_1 = arith.constant 0 : index
    %0 = vector.load %arg2[%c0, %c0_0, %c0_1] : memref<1x16x256xf32, #tpu.memory_space<vmem>>, vector<1x16x256xf32>
    %1 = vector.shape_cast %0 : vector<1x16x256xf32> to vector<16x256xf32>
    %cst = arith.constant dense<0.000000e+00> : vector<16xf32>
    %2 = vector.multi_reduction <add>, %1, %cst [1] : vector<16x256xf32> to vector<16xf32>
    %3 = vector.shape_cast %2 : vector<16xf32> to vector<16x1xf32>
    %cst_2 = arith.constant 2.560000e+02 : f32
    %4 = vector.broadcast %cst_2 : f32 to vector<16x1xf32>
    %5 = arith.divf %3, %4 : vector<16x1xf32>
    %6 = vector.broadcast %5 : vector<16x1xf32> to vector<16x256xf32>
    %7 = arith.subf %1, %6 : vector<16x256xf32>
    %8 = arith.mulf %7, %7 : vector<16x256xf32>
    %cst_3 = arith.constant dense<0.000000e+00> : vector<16xf32>
    %9 = vector.multi_reduction <add>, %8, %cst_3 [1] : vector<16x256xf32> to vector<16xf32>
    %10 = vector.shape_cast %9 : vector<16xf32> to vector<16x1xf32>
    %cst_4 = arith.constant 2.560000e+02 : f32
    %11 = vector.broadcast %cst_4 : f32 to vector<16x1xf32>
    %12 = arith.divf %10, %11 : vector<16x1xf32>
    %13 = vector.broadcast %5 : vector<16x1xf32> to vector<16x256xf32>
    %14 = arith.subf %1, %13 : vector<16x256xf32>
    %cst_5 = arith.constant 9.99999974E-6 : f32
    %15 = vector.broadcast %cst_5 : f32 to vector<16x1xf32>
    %16 = arith.addf %12, %15 : vector<16x1xf32>
    %17 = math.rsqrt %16 : vector<16x1xf32>
    %18 = vector.broadcast %17 : vector<16x1xf32> to vector<16x256xf32>
    %19 = arith.mulf %14, %18 : vector<16x256xf32>
    %c0_6 = arith.constant 0 : index
    %c0_7 = arith.constant 0 : index
    %20 = vector.load %arg3[%c0_6, %c0_7] : memref<1x256xf32, #tpu.memory_space<vmem>>, vector<1x256xf32>
    %21 = vector.shape_cast %20 : vector<1x256xf32> to vector<256xf32>
    %22 = vector.shape_cast %21 : vector<256xf32> to vector<1x256xf32>
    %23 = vector.broadcast %22 : vector<1x256xf32> to vector<16x256xf32>
    %24 = arith.mulf %19, %23 : vector<16x256xf32>
    %c0_8 = arith.constant 0 : index
    %c0_9 = arith.constant 0 : index
    %25 = vector.load %arg4[%c0_8, %c0_9] : memref<1x256xf32, #tpu.memory_space<vmem>>, vector<1x256xf32>
    %26 = vector.shape_cast %25 : vector<1x256xf32> to vector<256xf32>
    %27 = vector.shape_cast %26 : vector<256xf32> to vector<1x256xf32>
    %28 = vector.broadcast %27 : vector<1x256xf32> to vector<16x256xf32>
    %29 = arith.addf %24, %28 : vector<16x256xf32>
    %30 = arith.truncf %29 : vector<16x256xf32> to vector<16x256xbf16>
    %c0_10 = arith.constant 0 : index
    %c0_11 = arith.constant 0 : index
    %31 = vector.load %arg5[%c0_10, %c0_11] : memref<256x768xbf16, #tpu.memory_space<vmem>>, vector<256x768xbf16>
    %cst_12 = arith.constant dense<0.000000e+00> : vector<16x768xf32>
    %32 = tpu.matmul %30, %31, %cst_12 {dimension_numbers = #tpu.dot_dimension_numbers<[1], [0], [0], [1], [0, 0, 1, 1], [], []>} : vector<16x256xbf16>, vector<256x768xbf16>, vector<16x768xf32> -> vector<16x768xf32>
    %c0_13 = arith.constant 0 : index
    %c0_14 = arith.constant 0 : index
    %33 = vector.load %arg6[%c0_13, %c0_14] : memref<1x768xf32, #tpu.memory_space<vmem>>, vector<1x768xf32>
    %34 = vector.shape_cast %33 : vector<1x768xf32> to vector<768xf32>
    %35 = vector.shape_cast %34 : vector<768xf32> to vector<1x768xf32>
    %36 = vector.broadcast %35 : vector<1x768xf32> to vector<16x768xf32>
    %37 = arith.addf %32, %36 : vector<16x768xf32>
    %38 = arith.truncf %37 : vector<16x768xf32> to vector<16x768xbf16>
    %39 = vector.extract_strided_slice %38 {offsets = [0, 0], sizes = [16, 256], strides = [1, 1]} : vector<16x768xbf16> to vector<16x256xbf16>
    %c0_15 = arith.constant 0 : index
    %c0_16 = arith.constant 0 : index
    %c0_17 = arith.constant 0 : index
    %40 = vector.load %arg7[%c0_15, %c0_16, %c0_17] : memref<1x16x256xbf16, #tpu.memory_space<vmem>>, vector<1x16x256xbf16>
    %41 = vector.shape_cast %40 : vector<1x16x256xbf16> to vector<16x256xbf16>
    %42 = vector.shape_cast %39 : vector<16x256xbf16> to vector<1x16x256xbf16>
    tpu.vector_store %arg7[%c0_15, %c0_16, %c0_17], %42 {strides = array<i32>} : memref<1x16x256xbf16, #tpu.memory_space<vmem>>, vector<1x16x256xbf16>,
    %43 = vector.extract_strided_slice %38 {offsets = [0, 256], sizes = [16, 256], strides = [1, 1]} : vector<16x768xbf16> to vector<16x256xbf16>
    %c0_18 = arith.constant 0 : index
    %c0_19 = arith.constant 0 : index
    %c0_20 = arith.constant 0 : index
    %44 = vector.load %arg8[%c0_18, %c0_19, %c0_20] : memref<1x16x256xbf16, #tpu.memory_space<vmem>>, vector<1x16x256xbf16>
    %45 = vector.shape_cast %44 : vector<1x16x256xbf16> to vector<16x256xbf16>
    %46 = vector.shape_cast %43 : vector<16x256xbf16> to vector<1x16x256xbf16>
    tpu.vector_store %arg8[%c0_18, %c0_19, %c0_20], %46 {strides = array<i32>} : memref<1x16x256xbf16, #tpu.memory_space<vmem>>, vector<1x16x256xbf16>,
    %47 = vector.extract_strided_slice %38 {offsets = [0, 512], sizes = [16, 256], strides = [1, 1]} : vector<16x768xbf16> to vector<16x256xbf16>
    %c0_21 = arith.constant 0 : index
    %c0_22 = arith.constant 0 : index
    %c0_23 = arith.constant 0 : index
    %48 = vector.load %arg9[%c0_21, %c0_22, %c0_23] : memref<1x16x256xbf16, #tpu.memory_space<vmem>>, vector<1x16x256xbf16>
    %49 = vector.shape_cast %48 : vector<1x16x256xbf16> to vector<16x256xbf16>
    %50 = vector.shape_cast %47 : vector<16x256xbf16> to vector<1x16x256xbf16>
    tpu.vector_store %arg9[%c0_21, %c0_22, %c0_23], %50 {strides = array<i32>} : memref<1x16x256xbf16, #tpu.memory_space<vmem>>, vector<1x16x256xbf16>,
    return
  }
  func.func @transform_0(%arg0: i32, %arg1: i32) -> (i32, i32, i32) {
    %c0_i32 = arith.constant 0 : i32
    %c0_i32_0 = arith.constant 0 : i32
    return %arg0, %arg1, %c0_i32 : i32, i32, i32
  }
  func.func @transform_1(%arg0: i32, %arg1: i32) -> (i32, i32) {
    %c0_i32 = arith.constant 0 : i32
    %c0_i32_0 = arith.constant 0 : i32
    %c0_i32_1 = arith.constant 0 : i32
    return %c0_i32, %c0_i32_0 : i32, i32
  }
  func.func @transform_2(%arg0: i32, %arg1: i32) -> (i32, i32) {
    %c0_i32 = arith.constant 0 : i32
    %c0_i32_0 = arith.constant 0 : i32
    %c0_i32_1 = arith.constant 0 : i32
    return %c0_i32, %c0_i32_0 : i32, i32
  }
  func.func @transform_3(%arg0: i32, %arg1: i32) -> (i32, i32) {
    %c0_i32 = arith.constant 0 : i32
    %c0_i32_0 = arith.constant 0 : i32
    %c0_i32_1 = arith.constant 0 : i32
    return %c0_i32, %c0_i32_0 : i32, i32
  }
  func.func @transform_4(%arg0: i32, %arg1: i32) -> (i32, i32) {
    %c0_i32 = arith.constant 0 : i32
    %c0_i32_0 = arith.constant 0 : i32
    %c0_i32_1 = arith.constant 0 : i32
    return %c0_i32, %c0_i32_0 : i32, i32
  }
  func.func @transform_5(%arg0: i32, %arg1: i32) -> (i32, i32, i32) {
    %c0_i32 = arith.constant 0 : i32
    %c0_i32_0 = arith.constant 0 : i32
    return %arg0, %arg1, %c0_i32 : i32, i32, i32
  }
  func.func @transform_6(%arg0: i32, %arg1: i32) -> (i32, i32, i32) {
    %c0_i32 = arith.constant 0 : i32
    %c0_i32_0 = arith.constant 0 : i32
    return %arg0, %arg1, %c0_i32 : i32, i32, i32
  }
  func.func @transform_7(%arg0: i32, %arg1: i32) -> (i32, i32, i32) {
    %c0_i32 = arith.constant 0 : i32
    %c0_i32_0 = arith.constant 0 : i32
    return %arg0, %arg1, %c0_i32 : i32, i32, i32
  }
}

</mosaic_0001>

<bundles_post_ra>
// kernel: tpu_custom_call.1
= control target key start
LH: loop header
LB: loop body
LE: loop exit
PB: predicated region body
PF: predicated region fallthrough
CT: control target
= control target key end

     0   :  { %s2443_s0 = inlined_call_operand.hbm [shape: f32[2,16,256], index: 0, kind: input, shape index: {}]   ;;  %s2444_s1 = inlined_call_operand.vmem [shape: f32[1,256], index: 1, kind: input, shape index: {}]   ;;  %s2445_s2 = inlined_call_operand.vmem [shape: f32[1,256], index: 2, kind: input, shape index: {}]   ;;  %s2446_s3 = inlined_call_operand.hbm [shape: bf16[256,768], index: 3, kind: input, shape index: {}]   ;;  %s2447_s4 = inlined_call_operand.vmem [shape: f32[1,768], index: 4, kind: input, shape index: {}]   ;;  %s2448_s5 = inlined_call_operand.hbm [shape: bf16[2,16,256], index: 5, kind: output, shape index: {0}]   ;;  %s2449_s6 = inlined_call_operand.hbm [shape: bf16[2,16,256], index: 6, kind: output, shape index: {1}]   ;;  %s2450_s7 = inlined_call_operand.hbm [shape: bf16[2,16,256], index: 7, kind: output, shape index: {2}]  }
   0x1   :  { %2455 = sst [smem:[#allocation15_spill]] %s2443_s0 }
   0x2   :  { %2456 = sst [smem:[#allocation16_spill]] %s2444_s1 }
   0x3   :  { %2457 = sst [smem:[#allocation17_spill]] %s2445_s2 }
   0x4   :  { %2458 = sst [smem:[#allocation18_spill]] %s2446_s3 }
   0x5   :  { %13 = vsyncpa [#allocation3], 0 }
   0x6   :  { %15 = vsyncpa [#allocation3 + $0x1], 0 }
   0x7   :  { %16 = vsyncpa [#allocation6], 0 }
   0x8   :  { %17 = vsyncpa [#allocation4], 0 }
   0x9   :  { %19 = vsyncpa [#allocation4 + $0x1], 0 }
   0xa   :  { %20 = vsyncpa [#allocation9], 0 }
   0xb   :  { %22 = vsyncpa [#allocation9 + $0x1], 0  ;;  %s2067_s24 = smov 0   ;;  %s2069_s25 = smov 0  }
   0xc   :  { %s2071_s26 = smov 0   ;;  %s2073_s27 = smov 0  }
   0xd   :  { %s2075_s28 = smov 0   ;;  %s2077_s29 = smov 0  }
   0xe LB: > { %s2098_s30 = sadd.s32 4294967295, %s2014_s29   ;;  %s2454_s8 = sadd.s32 4294967294, %s2014_s29   ;;  %s2014_s29 = sphi %s2077_s29, %s28_s29   ;;  %s2010_s28 = sphi %s2075_s28, %s2482_s28   ;;  %s2006_s27 = sphi %s2073_s27, %s2481_s27   ;;  %s2002_s26 = sphi %s2071_s26, %s2480_s26   ;;  %s1998_s25 = sphi %s2069_s25, %s2479_s25   ;;  %s1994_s24 = sphi %s2067_s24, %s2478_s24  }
   0xf   : > { %p62_p0 = scmp.ne.s32.totalorder %s1998_s25, %s1994_s24  ;;  %p2451_p1 = scmp.eq.s32.totalorder %s2098_s30, 0 }
  0x10   : > { %p178_p3 = scmp.eq.s32.totalorder %s2454_s8, 1  ;;  %p1438_p5 = scmp.ge.s32.totalorder %s2014_s29, 1 }
  0x11   : > { %p2109_p4 = por %p2451_p1, %p62_p0  ;;  %p241_p7 = scmp.lt.s32.totalorder %s2014_s29, 3 }
  0x12   : > { %p2114_p6 = por %p178_p3, %p62_p0  ;;  %s2016_s12 = smov [#allocation5]  }
  0x13   : > { %s2459_s9 = scalar_select %p2109_p4, 1, 0 }
  0x14   : > { %s2460_s10 = scalar_select %p2114_p6, 1, 0 }
  0x15   : > { %p2119_p8 = pnand %p1438_p5, %p241_p7  ;;  %s259_s13 = sshll.u32 %s2016_s12, 4  ;;  %s260_s13 = int_to_ptr.vmem [resolvable:$true] %s259_s13 }
  0x16   : > { %s40_s15 = sadd.s32 1, %s2010_s28  ;;  %s2463_s3 = sld [smem:[#allocation18_spill]] }
  0x17   : > { %s2461_s11 = scalar_select %p2119_p8, 1, 0 }
  0x18   : > { %p1585_p9 = pneg %p2119_p8 }
  0x1a   : > { %p2128_p11 = pnand %p1585_p9, %p2451_p1 }
  0x1c   : > { %s1810_s18 = scalar_lea.hbm %s2463_s3, 12288  ;;  %p1812_p13 = pneg %p2128_p11 }
  0x1d   : > { %p1811_p12 = scmp.ne.s32.totalorder %s2463_s3, %s1810_s18  ;;  %p1817_p5 = scmp.lt.u32.totalorder %s1810_s18, %s2463_s3 }
  0x1f   : > { %p1813_p0 = pnand %p1812_p13, %p1811_p12 }
  0x21   : > { %p1814_p3 = pneg %p1813_p0 }
  0x23   : > { %p1819_p7 = pnand %p1817_p5, %p1814_p3 }
  0x25   : > { %1822 = shalt.err (!%p1819_p7)
}
  0x26   : > { %s1823_s23 = scalar_lea.vmem %s260_s13, 12288  ;;  %p1831_p2 = scmp.lt.s32.totalorder %s260_s13, %s260_s13 }
  0x27   : > { %p1824_p9 = scmp.ne.s32.totalorder %s260_s13, %s1823_s23  ;;  %p1832_p6 = scmp.lt.s32.totalorder %s1823_s23, %s1823_s23 }
  0x29   : > { %p1826_p10 = pnand %p1824_p9, %p1812_p13  ;;  %p1833_p4 = por %p1832_p6, %p1831_p2 }
  0x2b   : > { %p1827_p1 = pneg %p1826_p10 }
  0x2d   : > { %p1834_p8 = pnand %p1833_p4, %p1827_p1 }
  0x2f   : > { %1837 = shalt.err (!%p1834_p8)
}
  0x30   : > { %s2017_s12 = smov 384   ;;  %s2018_s16 = smov 24  }
  0x31   : > { %1588 = dma.hbm_to_vmem [thread:$0]  (!%p2128_p11), %s2463_s3, 12288, %s260_s13, [#allocation6], %s2017_s12, %s2017_s12, %s2018_s16  }
  0x32   : > { %p42_p1 = scmp.ge.s32.totalorder %s40_s15, 2  ;;  %s49_s19 = sadd.s32 1, %s2002_s26 }
  0x33   : > { %p56_p2 = scmp.ne.s32.totalorder %s2002_s26, %s1998_s25  ;;  %p57_p4 = scmp.eq.s32.totalorder %s2014_s29, 0 }
  0x34   : > { %s2484_s15 = smov (%p42_p1, %s40_s15), 0  ;;  %p2465_p8 = scmp.eq.s32.totalorder %s2098_s30, 1 }
  0x35   : > { %p2155_p6 = por %p57_p4, %p56_p2  ;;  %s44_s14 = ssub.s32 %s2010_s28, %s2484_s15 }
  0x36   : > { %p2161_p10 = por %p2465_p8, %p56_p2  ;;  %p1604_p12 = scmp.lt.s32.totalorder %s2014_s29, 2 }
  0x37   : > { %p47_p11 = scmp.eq.s32.totalorder %s44_s14, 0  ;;  %s276_s13 = sand.u32 1, %s2002_s26  }
  0x38   : > { %s1441_s22 = sshll.u32 %s276_s13, 5  ;;  %s1563_s12 = sshll.u32 %s2010_s28, 9 }
  0x39   : > { %s2170_s23 = scalar_select %p47_p11, %s2002_s26, %s49_s19  }
  0x3a   : > { %s2467_s0 = sld [smem:[#allocation15_spill]]  ;;  %s280_s8 = scalar_lea.vmem [#allocation2], %s1441_s22 }
  0x3b   : > { %s290_s3 = sshll.u32 %s280_s8, 4  ;;  %p2182_p13 = pnand %p1604_p12, %p2155_p6  ;;  %s2178_s3 = int_to_ptr.vmem [resolvable:$true] %s290_s3 }
  0x3c   : > { %s2186_s19 = scalar_lea.sflag [#allocation3], %s276_s13 }
  0x3d   : > { %p1840_p3 = pneg %p2182_p13 }
  0x40   : > { %s2176_s18 = scalar_lea.hbm %s2467_s0, %s1563_s12  ;;  %s1843_s20 = scalar_lea.hbm %s2467_s0, 1024 }
  0x41   : > { %s1838_s16 = scalar_lea.hbm %s2176_s18, 512  ;;  %p1844_p9 = scmp.lt.u32.totalorder %s2176_s18, %s2467_s0 }
  0x42   : > { %p1839_p0 = scmp.ne.s32.totalorder %s2176_s18, %s1838_s16  ;;  %p1845_p1 = scmp.lt.u32.totalorder %s1843_s20, %s1838_s16 }
  0x43   : > { %p1847_p4 = scmp.lt.u32.totalorder %s1838_s16, %s2176_s18 }
  0x44   : > { %p1841_p5 = pnand %p1840_p3, %p1839_p0  ;;  %p1846_p2 = por %p1845_p1, %p1844_p9 }
  0x46   : > { %p1842_p7 = pneg %p1841_p5  ;;  %p1848_p6 = por %p1847_p4, %p1846_p2 }
  0x48   : > { %p1849_p8 = pnand %p1848_p6, %p1842_p7 }
  0x4a   : > { %1852 = shalt.err (!%p1849_p8)
}
  0x4b   : > { %s1853_s13 = scalar_lea.vmem %s2178_s3, 512  ;;  %s2019_s8 = smov [#allocation2]  }
  0x4c   : > { %p1854_p12 = scmp.ne.s32.totalorder %s2178_s3, %s1853_s13  ;;  %s1858_s22 = sshll.u32 %s2019_s8, 4  ;;  %s1859_s22 = int_to_ptr.vmem [resolvable:$false] %s1858_s22 }
  0x4d   : > { %s1860_s12 = scalar_lea.vmem %s1859_s22, 1024  ;;  %p1861_p5 = scmp.lt.s32.totalorder %s2178_s3, %s1859_s22 }
  0x4e   : > { %p1856_p11 = pnand %p1854_p12, %p1840_p3  ;;  %p1862_p9 = scmp.lt.s32.totalorder %s1860_s12, %s1853_s13 }
  0x50   : > { %p1857_p0 = pneg %p1856_p11  ;;  %p1863_p1 = por %p1862_p9, %p1861_p5 }
  0x52   : > { %p1864_p2 = pnand %p1863_p1, %p1857_p0 }
  0x54   : > { %1867 = shalt.err (!%p1864_p2)
}
  0x55   : > { %s2020_s16 = smov 256   ;;  %s2021_s20 = smov 16  }
  0x56   : > { %1592 = dma.hbm_to_vmem [thread:$0]  (!%p2182_p13), %s2176_s18, 512, %s2178_s3, %s2186_s19, %s2020_s16, %s2020_s16, %s2021_s20  }
  0x57   : > { %p2469_p3 = scmp.ne.s32.totalorder %s2461_s11, 0 }
  0x58   : > { %s2217_s17 = sand.u32 (!%p2469_p3), 1, %s1998_s25   ;;  %p2470_p7 = scmp.ne.s32.totalorder (!%p2469_p3), %s2459_s9, 0 }
  0x59   : > { %302 = sbr.rel (%p2469_p3) target bundleno = 720 (0x2d0), region = 40  ;;  %s1445_s13 = sshll.u32 (!%p2469_p3), %s2217_s17, 5 }
  0x5a   : > { %s305_s8 = scalar_lea.sflag (!%p2469_p3), [#allocation3], %s2217_s17  ;;  %s308_s22 = scalar_lea.vmem (!%p2469_p3), [#allocation2], %s1445_s13 }
  0x60   : > { %1977 = dma.done.wait (%p2470_p7), %s305_s8, 512  }
  0x61   : > { %1979 = vsyncadd (%p2470_p7), %s305_s8, 4294966784  ;;  %p2471_p4 = scmp.eq.s32.totalorder %s2098_s30, 0 }
  0x63   : > { %1981 = dma.done.wait (%p2471_p4), [#allocation6], 12288   ;;  %p2472_p13 = pmov %p2471_p4 }
  0x64   : > { %v2229_v0 = vld [vmem:[%s308_s22] sm:$0xff]  ;;  %v2231_v1 = vld [vmem:[%s308_s22 + $0x8] sm:$0xff]  ;;  %v2233_v2 = vld [vmem:[%s308_s22 + $0x10] sm:$0xff]  ;;  %s2473_s1 = sld [smem:[#allocation16_spill]]  ;;  %s2474_s2 = sld [smem:[#allocation17_spill]] }
  0x65   : > { %1983 = vsyncadd (%p2472_p13), [#allocation6], 4294955008  ;;  %v361_v3 = vadd.f32 %v2231_v1, %v2229_v0  ;;  %v2237_v4 = vld [vmem:[%s308_s22 + $0x18] sm:$0xff]  ;;  %v1665_v8 = vld [vmem:[#allocation5 + $0xc] ss:$24 sps:$4 sm:$0xff]   ;;  %s2299_s12 = sshll.u32 %s2217_s17, 4 }
  0x66   : > { %v364_v5 = vadd.f32 %v2237_v4, %v2233_v2  ;;  %v1662_v6 = vld [vmem:[#allocation5 + $0x4] ss:$24 sps:$4 sm:$0xff]   ;;  %v1664_v7 = vld [vmem:[#allocation5] ss:$24 sps:$4 sm:$0xff]   ;;  %v1668_v10 = vld [vmem:[#allocation5 + $0x34] ss:$24 sps:$4 sm:$0xff]   ;;  %1079 = vmatprep.subr.bf16.mxu1 %v1665_v8 }
  0x67   : > { %362 = vadd.xlane.f32.xlu0 %v361_v3  ;;  %v1667_v9 = vld [vmem:[#allocation5 + $0x8] ss:$24 sps:$4 sm:$0xff]   ;;  %1036 = vmatprep.subr.bf16.mxu0 %v1662_v6  ;;  %v1671_v11 = vld [vmem:[#allocation5 + $0x3c] ss:$24 sps:$4 sm:$0xff]   ;;  %v1673_v13 = vld [vmem:[#allocation5 + $0x38] ss:$24 sps:$4 sm:$0xff]  }
  0x68   : > { %1037 = vmatpush1.bf16.msra.mxu0 %v1664_v7  ;;  %1080 = vmatpush1.bf16.msra.mxu1 %v1667_v9  ;;  %v1670_v12 = vld [vmem:[#allocation5 + $0x30] ss:$24 sps:$4 sm:$0xff]   ;;  %v1674_v14 = vld [vmem:[#allocation5 + $0x64] ss:$24 sps:$4 sm:$0xff]   ;;  %v1676_v16 = vld [vmem:[#allocation5 + $0x60] ss:$24 sps:$4 sm:$0xff]  }
  0x69   : > { %1038 = vmatprep.subr.bf16.mxu0 %v1668_v10  ;;  %1081 = vmatprep.subr.bf16.mxu1 %v1671_v11  ;;  %v1677_v15 = vld [vmem:[#allocation5 + $0x6c] ss:$24 sps:$4 sm:$0xff]   ;;  %v1679_v17 = vld [vmem:[#allocation5 + $0x68] ss:$24 sps:$4 sm:$0xff]   ;;  %v1683_v19 = vld [vmem:[#allocation5 + $0x9c] ss:$24 sps:$4 sm:$0xff]  }
  0x6a   : > { %v1680_v18 = vld [vmem:[#allocation5 + $0x94] ss:$24 sps:$4 sm:$0xff]   ;;  %v1682_v20 = vld [vmem:[#allocation5 + $0x90] ss:$24 sps:$4 sm:$0xff]   ;;  %v1686_v22 = vld [vmem:[#allocation5 + $0xc4] ss:$24 sps:$4 sm:$0xff]  }
  0x6b   : > { %365 = vadd.xlane.f32.xlu0 %v364_v5  ;;  %v1685_v21 = vld [vmem:[#allocation5 + $0x98] ss:$24 sps:$4 sm:$0xff]   ;;  %v1689_v23 = vld [vmem:[#allocation5 + $0xcc] ss:$24 sps:$4 sm:$0xff]   ;;  %v1691_v25 = vld [vmem:[#allocation5 + $0xc8] ss:$24 sps:$4 sm:$0xff]  }
  0x6c   : > { %1039 = vmatpush1.bf16.msra.mxu0 %v1670_v12  ;;  %1082 = vmatpush1.bf16.msra.mxu1 %v1673_v13  ;;  %v1688_v24 = vld [vmem:[#allocation5 + $0xc0] ss:$24 sps:$4 sm:$0xff]   ;;  %v1692_v26 = vld [vmem:[#allocation5 + $0xf4] ss:$24 sps:$4 sm:$0xff]   ;;  %v1694_v28 = vld [vmem:[#allocation5 + $0xf0] ss:$24 sps:$4 sm:$0xff]  }
  0x6d   : > { %1040 = vmatprep.subr.bf16.mxu0 %v1674_v14  ;;  %1083 = vmatprep.subr.bf16.mxu1 %v1677_v15  ;;  %v1695_v27 = vld [vmem:[#allocation5 + $0xfc] ss:$24 sps:$4 sm:$0xff]   ;;  %v1697_v29 = vld [vmem:[#allocation5 + $0xf8] ss:$24 sps:$4 sm:$0xff]   ;;  %v1701_v31 = vld [vmem:[#allocation5 + $0x12c] ss:$24 sps:$4 sm:$0xff]  }
  0x6e   : > { %v1698_v30 = vld [vmem:[#allocation5 + $0x124] ss:$24 sps:$4 sm:$0xff]   ;;  %v1700_v32 = vld [vmem:[#allocation5 + $0x120] ss:$24 sps:$4 sm:$0xff]   ;;  %v1704_v34 = vld [vmem:[#allocation5 + $0x154] ss:$24 sps:$4 sm:$0xff]  }
  0x6f   : > { %v1703_v33 = vld [vmem:[#allocation5 + $0x128] ss:$24 sps:$4 sm:$0xff]   ;;  %v1707_v35 = vld [vmem:[#allocation5 + $0x15c] ss:$24 sps:$4 sm:$0xff]   ;;  %v1709_v37 = vld [vmem:[#allocation5 + $0x158] ss:$24 sps:$4 sm:$0xff]  }
  0x70   : > { %1041 = vmatpush1.bf16.msra.mxu0 %v1676_v16  ;;  %1084 = vmatpush1.bf16.msra.mxu1 %v1679_v17  ;;  %v1706_v36 = vld [vmem:[#allocation5 + $0x150] ss:$24 sps:$4 sm:$0xff]   ;;  %v1710_v38 = vld [vmem:[#allocation5 + $0x184] ss:$24 sps:$4 sm:$0xff]   ;;  %v1712_v40 = vld [vmem:[#allocation5 + $0x180] ss:$24 sps:$4 sm:$0xff]  }
  0x71   : > { %1042 = vmatprep.subr.bf16.mxu0 %v1680_v18  ;;  %1085 = vmatprep.subr.bf16.mxu1 %v1683_v19  ;;  %v1713_v39 = vld [vmem:[#allocation5 + $0x18c] ss:$24 sps:$4 sm:$0xff]   ;;  %v1715_v41 = vld [vmem:[#allocation5 + $0x188] ss:$24 sps:$4 sm:$0xff]   ;;  %v1719_v58 = vld [vmem:[#allocation5 + $0x1bc] ss:$24 sps:$4 sm:$0xff]  }
  0x72   : > { %v1716_v42 = vld [vmem:[#allocation5 + $0x1b4] ss:$24 sps:$4 sm:$0xff]   ;;  %v1718_v57 = vld [vmem:[#allocation5 + $0x1b0] ss:$24 sps:$4 sm:$0xff]   ;;  %v1722_v60 = vld [vmem:[#allocation5 + $0x1e4] ss:$24 sps:$4 sm:$0xff]  }
  0x73   : > { %v1721_v59 = vld [vmem:[#allocation5 + $0x1b8] ss:$24 sps:$4 sm:$0xff]   ;;  %v1725_v62 = vld [vmem:[#allocation5 + $0x1ec] ss:$24 sps:$4 sm:$0xff]   ;;  %v1727_v63 = vld [vmem:[#allocation5 + $0x1e8] ss:$24 sps:$4 sm:$0xff]  }
  0x74   : > { %1043 = vmatpush1.bf16.msra.mxu0 %v1682_v20  ;;  %1086 = vmatpush1.bf16.msra.mxu1 %v1685_v21  ;;  %v1724_v61 = vld [vmem:[#allocation5 + $0x1e0] ss:$24 sps:$4 sm:$0xff]   ;;  %v1737_v6 = vld [vmem:[#allocation5 + $0x24c] ss:$24 sps:$4 sm:$0xff]   ;;  %v1743_v9 = vld [vmem:[#allocation5 + $0x27c] ss:$24 sps:$4 sm:$0xff]  }
  0x75   : > { %1044 = vmatprep.subr.bf16.mxu0 %v1686_v22  ;;  %1087 = vmatprep.subr.bf16.mxu1 %v1689_v23  ;;  %v1733_v3 = vld [vmem:[#allocation5 + $0x218] ss:$24 sps:$4 sm:$0xff]   ;;  %v1739_v7 = vld [vmem:[#allocation5 + $0x248] ss:$24 sps:$4 sm:$0xff]   ;;  %v1740_v8 = vld [vmem:[#allocation5 + $0x274] ss:$24 sps:$4 sm:$0xff]  }
  0x76   : > { %v1736_v5 = vld [vmem:[#allocation5 + $0x240] ss:$24 sps:$4 sm:$0xff]   ;;  %v1742_v10 = vld [vmem:[#allocation5 + $0x270] ss:$24 sps:$4 sm:$0xff]   ;;  %v1746_v12 = vld [vmem:[#allocation5 + $0x2a4] ss:$24 sps:$4 sm:$0xff]  }
  0x77   : > { %v1745_v11 = vld [vmem:[#allocation5 + $0x278] ss:$24 sps:$4 sm:$0xff]   ;;  %v1749_v13 = vld [vmem:[#allocation5 + $0x2ac] ss:$24 sps:$4 sm:$0xff]   ;;  %v1751_v15 = vld [vmem:[#allocation5 + $0x2a8] ss:$24 sps:$4 sm:$0xff]  }
  0x78   : > { %1045 = vmatpush1.bf16.msra.mxu0 %v1688_v24  ;;  %1088 = vmatpush1.bf16.msra.mxu1 %v1691_v25  ;;  %v1748_v14 = vld [vmem:[#allocation5 + $0x2a0] ss:$24 sps:$4 sm:$0xff]   ;;  %v1752_v16 = vld [vmem:[#allocation5 + $0x2d4] ss:$24 sps:$4 sm:$0xff]   ;;  %v1754_v18 = vld [vmem:[#allocation5 + $0x2d0] ss:$24 sps:$4 sm:$0xff]   ;;  %v396_v25 = vlaneseq }
  0x79   : > { %1046 = vmatprep.subr.bf16.mxu0 %v1692_v26  ;;  %1089 = vmatprep.subr.bf16.mxu1 %v1695_v27  ;;  %v1755_v17 = vld [vmem:[#allocation5 + $0x2dc] ss:$24 sps:$4 sm:$0xff]   ;;  %v1757_v19 = vld [vmem:[#allocation5 + $0x2d8] ss:$24 sps:$4 sm:$0xff]   ;;  %s338_s16 = scalar_lea.vmem [#allocation7], %s2299_s12  ;;  %s345_s13 = scalar_lea.vmem [#allocation8], %s2299_s12 }
  0x7a   : > { %v1760_v20 = vld [vmem:[#allocation5 + $0x14] ss:$24 sps:$4 sm:$0xff]   ;;  %s1234_s20 = sshll.u32 %s338_s16, 4  ;;  %s1253_s8 = sshll.u32 %s345_s13, 4  ;;  %s2310_s20 = int_to_ptr.vmem [resolvable:$true] %s1234_s20  ;;  %s2312_s8 = int_to_ptr.vmem [resolvable:$true] %s1253_s8 }
  0x7b   : > { %s1212_s22 = sand.u32 1, %s2098_s30   ;;  %s2308_s3 = sshll.u32 %s2006_s27, 8 }
  0x7c   : > { %1047 = vmatpush1.bf16.msra.mxu0 %v1694_v28  ;;  %1090 = vmatpush1.bf16.msra.mxu1 %v1697_v29  ;;  %v2261_v28 = vshrl.u32 %v396_v25, 7  ;;  %s2318_s9 = scalar_lea.hbm %s2449_s6, %s2308_s3  ;;  %s2324_s14 = scalar_lea.hbm %s2448_s5, %s2308_s3 }
  0x7d   : > { %1048 = vmatprep.subr.bf16.mxu0 %v1698_v30  ;;  %1091 = vmatprep.subr.bf16.mxu1 %v1701_v31  ;;  %v394_v31 = vld [vmem:[%s2473_s1] sm:$0x3]  ;;  %s2326_s19 = scalar_lea.sflag [#allocation9], %s1212_s22  ;;  %s1868_s0 = scalar_lea.vmem %s2312_s8, 256 }
  0x7e   : > { %v2264_v29 = vsub.s32 1, %v2261_v28  ;;  %v2267_v30 = vsub.s32 0, %v2261_v28  ;;  %p1869_p6 = scmp.ne.s32.totalorder %s2312_s8, %s1868_s0  ;;  %s2022_s1 = smov [#allocation8]  }
  0x80   : > { %1049 = vmatpush1.bf16.msra.mxu0 %v1700_v32  ;;  %1092 = vmatpush1.bf16.msra.mxu1 %v1703_v33  ;;  %p1870_p8 = pnand %p1869_p6, %p2161_p10 }
  0x81   : > { %1050 = vmatprep.subr.bf16.mxu0 %v1704_v34  ;;  %1093 = vmatprep.subr.bf16.mxu1 %v1707_v35  ;;  %v403_v34 = vrot.slane %v394_v31, %v2264_v29  ;;  %v410_v35 = vld [vmem:[%s2474_s2] sm:$0x3]  ;;  %s1872_s2 = sshll.u32 %s2022_s1, 4  ;;  %s1873_s2 = int_to_ptr.vmem [resolvable:$false] %s1872_s2 }
  0x82   : > { %p1871_p12 = pneg %p1870_p8  ;;  %s1874_s27 = scalar_lea.vmem %s1873_s2, 512 }
  0x83   : > { %p1875_p11 = scmp.lt.s32.totalorder %s2312_s8, %s1873_s2  ;;  %p1876_p0 = scmp.lt.s32.totalorder %s1874_s27, %s1868_s0 }
  0x84   : > { %1051 = vmatpush1.bf16.msra.mxu0 %v1706_v36  ;;  %1094 = vmatpush1.bf16.msra.mxu1 %v1709_v37  ;;  %v399_v37 = vrot.slane %v394_v31, %v2267_v30 }
  0x85   : > { %1052 = vmatprep.subr.bf16.mxu0 %v1710_v38  ;;  %1095 = vmatprep.subr.bf16.mxu1 %v1713_v39  ;;  %v419_v39 = vrot.slane %v410_v35, %v2264_v29  ;;  %p1877_p5 = por %p1876_p0, %p1875_p11 }
  0x87   : > { %p1878_p9 = pnand %p1877_p5, %p1871_p12 }
  0x88   : > { %1053 = vmatpush1.bf16.msra.mxu0 %v1712_v40  ;;  %1096 = vmatpush1.bf16.msra.mxu1 %v1715_v41  ;;  %v415_v40 = vrot.slane %v410_v35, %v2267_v30 }
  0x89   : > { %1054 = vmatprep.subr.bf16.mxu0 %v1716_v42  ;;  %1097 = vmatprep.subr.bf16.mxu1 %v1719_v58  ;;  %v1769_v58 = vld [vmem:[#allocation5 + $0xa4] ss:$24 sps:$4 sm:$0xff]  }
  0x8c   : > { %1055 = vmatpush1.bf16.msra.mxu0 %v1718_v57  ;;  %1098 = vmatpush1.bf16.msra.mxu1 %v1721_v59  ;;  %v1764_v57 = vld [vmem:[#allocation5 + $0x70] ss:$24 sps:$4 sm:$0xff]   ;;  %v1767_v59 = vld [vmem:[#allocation5 + $0xa0] ss:$24 sps:$4 sm:$0xff]  }
  0x8d   : > { %1056 = vmatprep.subr.bf16.mxu0 %v1722_v60  ;;  %1099 = vmatprep.subr.bf16.mxu1 %v1725_v62  ;;  %v1772_v60 = vld [vmem:[#allocation5 + $0xd4] ss:$24 sps:$4 sm:$0xff]   ;;  %v1775_v62 = vld [vmem:[#allocation5 + $0x104] ss:$24 sps:$4 sm:$0xff]  }
  0x90   : > { %1057 = vmatpush1.bf16.msra.mxu0 %v1724_v61  ;;  %1100 = vmatpush1.bf16.msra.mxu1 %v1727_v63  ;;  %v1770_v61 = vld [vmem:[#allocation5 + $0xd0] ss:$24 sps:$4 sm:$0xff]   ;;  %v1773_v63 = vld [vmem:[#allocation5 + $0x100] ss:$24 sps:$4 sm:$0xff]  }
  0xf4   : > { %v363_v43 = vpop.xlane.xlu0 %362 }
  0xf5   : > { %v368_v44 = vmul.f32 0.00390625, %v363_v43 }
  0xf7   : > { %v2242_v45 = vsub.f32 %v2229_v0, %v368_v44  ;;  %v2245_v46 = vsub.f32 %v2231_v1, %v368_v44  ;;  %v1728_v0 = vld [vmem:[#allocation5 + $0x214] ss:$24 sps:$4 sm:$0xff]   ;;  %v1730_v1 = vld [vmem:[#allocation5 + $0x210] ss:$24 sps:$4 sm:$0xff]  }
  0xf8   : > { %v366_v47 = vpop.xlane.xlu0 %365  ;;  %1058 = vmatprep.subr.bf16.mxu0 %v1728_v0  ;;  %v1778_v0 = vld [vmem:[#allocation5 + $0x134] ss:$24 sps:$4 sm:$0xff]  }
  0xf9   : > { %v369_v48 = vmul.f32 0.00390625, %v366_v47  ;;  %v374_v49 = vmul.f32 %v2242_v45, %v2242_v45  ;;  %v375_v50 = vmul.f32 %v2245_v46, %v2245_v46  ;;  %1059 = vmatpush1.bf16.msra.mxu0 %v1730_v1  ;;  %v1776_v1 = vld [vmem:[#allocation5 + $0x130] ss:$24 sps:$4 sm:$0xff]  }
  0xfb   : > { %v2252_v51 = vsub.f32 %v2233_v2, %v369_v48  ;;  %v2255_v52 = vsub.f32 %v2237_v4, %v369_v48  ;;  %v378_v53 = vadd.f32 %v375_v50, %v374_v49  ;;  %v1731_v2 = vld [vmem:[#allocation5 + $0x21c] ss:$24 sps:$4 sm:$0xff]  }
  0xfc   : > { %1101 = vmatprep.subr.bf16.mxu1 %v1731_v2  ;;  %v1734_v4 = vld [vmem:[#allocation5 + $0x244] ss:$24 sps:$4 sm:$0xff]  }
  0xfd   : > { %379 = vadd.xlane.f32.xlu1 %v378_v53  ;;  %v376_v54 = vmul.f32 %v2252_v51, %v2252_v51  ;;  %v377_v55 = vmul.f32 %v2255_v52, %v2255_v52  ;;  %1102 = vmatpush1.bf16.msra.mxu1 %v1733_v3  ;;  %v1781_v2 = vld [vmem:[#allocation5 + $0x164] ss:$24 sps:$4 sm:$0xff]   ;;  %v1779_v3 = vld [vmem:[#allocation5 + $0x160] ss:$24 sps:$4 sm:$0xff]  }
  0xfe   : > { %1060 = vmatprep.subr.bf16.mxu0 %v1734_v4  ;;  %1103 = vmatprep.subr.bf16.mxu1 %v1737_v6  ;;  %v1784_v4 = vld [vmem:[#allocation5 + $0x194] ss:$24 sps:$4 sm:$0xff]   ;;  %v1787_v6 = vld [vmem:[#allocation5 + $0x1c4] ss:$24 sps:$4 sm:$0xff]  }
  0xff   : > { %v381_v56 = vadd.f32 %v377_v55, %v376_v54  ;;  %1061 = vmatpush1.bf16.msra.mxu0 %v1736_v5  ;;  %v1758_v54 = vld [vmem:[#allocation5 + $0x10] ss:$24 sps:$4 sm:$0xff]  }
 0x100   : > { %1062 = vmatprep.subr.bf16.mxu0 %v1740_v8  ;;  %v1782_v5 = vld [vmem:[#allocation5 + $0x190] ss:$24 sps:$4 sm:$0xff]   ;;  %v1790_v8 = vld [vmem:[#allocation5 + $0x1f4] ss:$24 sps:$4 sm:$0xff]  }
 0x101   : > { %382 = vadd.xlane.f32.xlu1 %v381_v56  ;;  %1104 = vmatpush1.bf16.msra.mxu1 %v1739_v7  ;;  %v1763_v56 = vld [vmem:[#allocation5 + $0x44] ss:$24 sps:$4 sm:$0xff]   ;;  %v1785_v7 = vld [vmem:[#allocation5 + $0x1c0] ss:$24 sps:$4 sm:$0xff]  }
 0x102   : > { %1105 = vmatprep.subr.bf16.mxu1 %v1743_v9  ;;  %v1788_v9 = vld [vmem:[#allocation5 + $0x1f0] ss:$24 sps:$4 sm:$0xff]  }
 0x103   : > { %1063 = vmatpush1.bf16.msra.mxu0 %v1742_v10  ;;  %v1793_v10 = vld [vmem:[#allocation5 + $0x224] ss:$24 sps:$4 sm:$0xff]  }
 0x104   : > { %1064 = vmatprep.subr.bf16.mxu0 %v1746_v12  ;;  %v1796_v12 = vld [vmem:[#allocation5 + $0x254] ss:$24 sps:$4 sm:$0xff]  }
 0x105   : > { %1106 = vmatpush1.bf16.msra.mxu1 %v1745_v11  ;;  %v1791_v11 = vld [vmem:[#allocation5 + $0x220] ss:$24 sps:$4 sm:$0xff]  }
 0x106   : > { %1107 = vmatprep.subr.bf16.mxu1 %v1749_v13  ;;  %v1794_v13 = vld [vmem:[#allocation5 + $0x250] ss:$24 sps:$4 sm:$0xff]  }
 0x107   : > { %1065 = vmatpush1.bf16.msra.mxu0 %v1748_v14  ;;  %v1799_v14 = vld [vmem:[#allocation5 + $0x284] ss:$24 sps:$4 sm:$0xff]  }
 0x108   : > { %1066 = vmatprep.subr.bf16.mxu0 %v1752_v16  ;;  %v1802_v16 = vld [vmem:[#allocation5 + $0x2b4] ss:$24 sps:$4 sm:$0xff]  }
 0x109   : > { %1108 = vmatpush1.bf16.msra.mxu1 %v1751_v15  ;;  %v1797_v15 = vld [vmem:[#allocation5 + $0x280] ss:$24 sps:$4 sm:$0xff]  }
 0x10a   : > { %1109 = vmatprep.subr.bf16.mxu1 %v1755_v17  ;;  %v1800_v17 = vld [vmem:[#allocation5 + $0x2b0] ss:$24 sps:$4 sm:$0xff]  }
 0x10b   : > { %1067 = vmatpush1.bf16.msra.mxu0 %v1754_v18  ;;  %v1805_v18 = vld [vmem:[#allocation5 + $0x2e4] ss:$24 sps:$4 sm:$0xff]  }
 0x10c   : > { %1122 = vmatprep.subr.bf16.mxu0 %v1760_v20  ;;  %v536_v20 = vsub.s32 2, %v2261_v28 }
 0x10d   : > { %1110 = vmatpush1.bf16.msra.mxu1 %v1757_v19  ;;  %v1803_v19 = vld [vmem:[#allocation5 + $0x2e0] ss:$24 sps:$4 sm:$0xff]  }
 0x18a   : > { %v380_v21 = vpop.xlane.xlu1 %379 }
 0x18b   : > { %v384_v22 = vmul.f32 0.00390625, %v380_v21  ;;  %v2292_v21 = vld [vmem:[%s2447_s4] sm:$0x3f] }
 0x18c   : > { %v533_v25 = vrot.slane %v2292_v21, %v2264_v29 }
 0x18d   : > { %v386_v23 = vadd.f32 1e-05, %v384_v22  ;;  %v540_v22 = vsub.s32 3, %v2261_v28 }
 0x18e   : > { %v383_v24 = vpop.xlane.xlu1 %382 }
 0x18f   : > { %1806 = vrsqrt.f32 %v386_v23  ;;  %v385_v26 = vmul.f32 0.00390625, %v383_v24  ;;  %v529_v23 = vrot.slane %v2292_v21, %v2267_v30  ;;  %v537_v24 = vrot.slane %v2292_v21, %v536_v20 }
 0x191   : > { %v387_v27 = vadd.f32 1e-05, %v385_v26  ;;  %v541_v26 = vrot.slane %v2292_v21, %v540_v22 }
 0x193   : > { %1808 = vrsqrt.f32 %v387_v27 }
 0x199   : > { %v1807_v32 = vpop.eup %1806 }
 0x19a   : > { %v391_v33 = vmul.f32 %v1807_v32, %v2245_v46  ;;  %v390_v36 = vmul.f32 %v1807_v32, %v2242_v45 }
 0x19c   : > { %v407_v42 = vmul.f32 %v403_v34, %v391_v33  ;;  %v406_v44 = vmul.f32 %v399_v37, %v390_v36 }
 0x19d   : > { %v1809_v38 = vpop.eup %1808 }
 0x19e   : > { %v393_v41 = vmul.f32 %v1809_v38, %v2255_v52  ;;  %v392_v43 = vmul.f32 %v1809_v38, %v2252_v51  ;;  %v423_v48 = vadd.f32 %v419_v39, %v407_v42  ;;  %v422_v50 = vadd.f32 %v415_v40, %v406_v44  ;;  %v1761_v51 = vld [vmem:[#allocation5 + $0x40] ss:$24 sps:$4 sm:$0xff]   ;;  %v1766_v52 = vld [vmem:[#allocation5 + $0x74] ss:$24 sps:$4 sm:$0xff]  }
 0x1a0   : > { %v409_v46 = vmul.f32 %v403_v34, %v393_v41  ;;  %v408_v47 = vmul.f32 %v399_v37, %v392_v43 }
 0x1a2   : > { %v425_v49 = vadd.f32 %v419_v39, %v409_v46  ;;  %v424_v53 = vadd.f32 %v415_v40, %v408_v47 }
 0x1a4   : > { %v427_v45 = vpack.c.bf16 %v425_v49, %v423_v48  ;;  %v2283_v55 = vpack.c.bf16 %v424_v53, %v422_v50 }
 0x1a6   : > { %1068 = vmatprep.mubr.bf16.mxu0 %v427_v45  ;;  %1111 = vmatprep.mubr.bf16.mxu1 %v427_v45 }
 0x1a7   : > { %1069 = vmatmul.mubr.bf16.vlgmr.msra.gmra.mrb[0].mxu0 %v2283_v55  ;;  %1112 = vmatmul.mubr.bf16.vlgmr.msra.gmra.mrb[0].mxu1 %v2283_v55 }
 0x1a8   : > { %1123 = vmatpush1.bf16.msra.mxu0 %v1758_v54  ;;  %1154 = vmatprep.mubr.bf16.mxu0 %v427_v45 }
 0x1a9   : > { %1124 = vmatprep.subr.bf16.mxu0 %v1763_v56 }
 0x1ac   : > { %1125 = vmatpush1.bf16.msra.mxu0 %v1761_v51 }
 0x1ad   : > { %1126 = vmatprep.subr.bf16.mxu0 %v1766_v52 }
 0x1b0   : > { %1127 = vmatpush1.bf16.msra.mxu0 %v1764_v57 }
 0x1b1   : > { %1128 = vmatprep.subr.bf16.mxu0 %v1769_v58 }
 0x1b4   : > { %1129 = vmatpush1.bf16.msra.mxu0 %v1767_v59 }
 0x1b5   : > { %1130 = vmatprep.subr.bf16.mxu0 %v1772_v60 }
 0x1b8   : > { %1131 = vmatpush1.bf16.msra.mxu0 %v1770_v61 }
 0x1b9   : > { %1132 = vmatprep.subr.bf16.mxu0 %v1775_v62 }
 0x1bc   : > { %1133 = vmatpush1.bf16.msra.mxu0 %v1773_v63 }
 0x1bd   : > { %1134 = vmatprep.subr.bf16.mxu0 %v1778_v0 }
 0x1c0   : > { %1135 = vmatpush1.bf16.msra.mxu0 %v1776_v1 }
 0x1c1   : > { %1136 = vmatprep.subr.bf16.mxu0 %v1781_v2 }
 0x1c4   : > { %1137 = vmatpush1.bf16.msra.mxu0 %v1779_v3 }
 0x1c5   : > { %1138 = vmatprep.subr.bf16.mxu0 %v1784_v4 }
 0x1c8   : > { %1139 = vmatpush1.bf16.msra.mxu0 %v1782_v5 }
 0x1c9   : > { %1140 = vmatprep.subr.bf16.mxu0 %v1787_v6 }
 0x1cc   : > { %1141 = vmatpush1.bf16.msra.mxu0 %v1785_v7 }
 0x1cd   : > { %1142 = vmatprep.subr.bf16.mxu0 %v1790_v8 }
 0x1d0   : > { %1143 = vmatpush1.bf16.msra.mxu0 %v1788_v9 }
 0x1d1   : > { %1144 = vmatprep.subr.bf16.mxu0 %v1793_v10 }
 0x1d4   : > { %1145 = vmatpush1.bf16.msra.mxu0 %v1791_v11 }
 0x1d5   : > { %1146 = vmatprep.subr.bf16.mxu0 %v1796_v12 }
 0x1d8   : > { %1147 = vmatpush1.bf16.msra.mxu0 %v1794_v13 }
 0x1d9   : > { %1148 = vmatprep.subr.bf16.mxu0 %v1799_v14 }
 0x1dc   : > { %1149 = vmatpush1.bf16.msra.mxu0 %v1797_v15 }
 0x1dd   : > { %1150 = vmatprep.subr.bf16.mxu0 %v1802_v16 }
 0x1e0   : > { %1151 = vmatpush1.bf16.msra.mxu0 %v1800_v17 }
 0x1e1   : > { %1152 = vmatprep.subr.bf16.mxu0 %v1805_v18 }
 0x1e4   : > { %1153 = vmatpush1.bf16.msra.mxu0 %v1803_v19 }
 0x1e7   : > { %1155 = vmatmul.mubr.bf16.vlgmr.msra.gmra.mrb[4].mxu0 %v2283_v55 }
 0x27a   : > { %v1070_v27 = vpop.f32.mrb[0].mxu0  ;;  %v1113_v31 = vpop.f32.mrb[0].mxu1 }
 0x27b   : > { %v1071_v32 = vadd.f32 %v1070_v27, %v529_v23  ;;  %v1114_v33 = vadd.f32 %v1113_v31, %v537_v24  ;;  %v1072_v34 = vpop.f32.mrb[1].mxu0  ;;  %v1115_v30 = vpop.f32.mrb[1].mxu1 }
 0x27c   : > { %v1073_v35 = vadd.f32 %v1072_v34, %v533_v25  ;;  %v1116_v36 = vadd.f32 %v1115_v30, %v541_v26  ;;  %v1074_v37 = vpop.f32.mrb[2].mxu0  ;;  %v1117_v38 = vpop.f32.mrb[2].mxu1 }
 0x27d   : > { %v1075_v29 = vadd.f32 %v1074_v37, %v529_v23  ;;  %v1118_v39 = vadd.f32 %v1117_v38, %v537_v24  ;;  %v1076_v40 = vpop.f32.mrb[3].mxu0  ;;  %v1119_v41 = vpop.f32.mrb[3].mxu1 }
 0x27e   : > { %v1564_v42 = vpack.c.bf16 %v1073_v35, %v1071_v32  ;;  %v1566_v43 = vpack.c.bf16 %v1116_v36, %v1114_v33  ;;  %v1077_v44 = vadd.f32 %v1076_v40, %v533_v25  ;;  %v1120_v46 = vadd.f32 %v1119_v41, %v541_v26 }
 0x280   : > { %1181 = vst [vmem:[%s338_s16] sm:$0xff] %v1564_v42  ;;  %1193 = vst [vmem:[%s345_s13] sm:$0xff] %v1566_v43  ;;  %v1565_v47 = vpack.c.bf16 %v1077_v44, %v1075_v29  ;;  %v1567_v48 = vpack.c.bf16 %v1120_v46, %v1118_v39 }
 0x282   : > { %1182 = vst [vmem:[%s338_s16 + $0x8] sm:$0xff] %v1565_v47  ;;  %1194 = vst [vmem:[%s345_s13 + $0x8] sm:$0xff] %v1567_v48 }
 0x283   : > { %1881 = shalt.err (!%p1878_p9)
}
 0x284   : > { %s1882_s16 = scalar_lea.hbm %s2318_s9, 256  ;;  %s1886_s1 = scalar_lea.hbm %s2449_s6, 512 }
 0x285   : > { %p1883_p1 = scmp.ne.s32.totalorder %s2318_s9, %s1882_s16  ;;  %p1887_p7 = scmp.lt.u32.totalorder %s2318_s9, %s2449_s6 }
 0x286   : > { %p1888_p4 = scmp.lt.u32.totalorder %s1886_s1, %s1882_s16  ;;  %p1890_p6 = scmp.lt.u32.totalorder %s1882_s16, %s2318_s9 }
 0x287   : > { %p1884_p2 = pnand %p1883_p1, %p2161_p10 }
 0x288   : > { %p1889_p13 = por %p1888_p4, %p1887_p7 }
 0x289   : > { %p1885_p3 = pneg %p1884_p2 }
 0x28a   : > { %p1891_p8 = por %p1890_p6, %p1889_p13 }
 0x28c   : > { %p1892_p12 = pnand %p1891_p8, %p1885_p3 }
 0x28e   : > { %1895 = shalt.err (!%p1892_p12)
}
 0x28f   : > { %s2023_s0 = smov 128   ;;  %s2024_s11 = smov 8  }
 0x290   : > { %1580 = dma.vmem_to_hbm [thread:$0]  (%p2161_p10), %s2312_s8, 256, %s2318_s9, %s2326_s19, %s2023_s0, %s2023_s0, %s2024_s11  }
 0x291   : > { %s1208_s18 = scalar_lea.sflag [#allocation4], %s2217_s17  ;;  %s1896_s27 = scalar_lea.vmem %s2310_s20, 256 }
 0x292   : > { %p1897_p11 = scmp.ne.s32.totalorder %s2310_s20, %s1896_s27  ;;  %s2025_s16 = smov [#allocation7]  }
 0x293   : > { %s1900_s13 = sshll.u32 %s2025_s16, 4  ;;  %s1901_s13 = int_to_ptr.vmem [resolvable:$false] %s1900_s13 }
 0x294   : > { %p1898_p0 = pnand %p1897_p11, %p2161_p10  ;;  %s1902_s22 = scalar_lea.vmem %s1901_s13, 512 }
 0x295   : > { %p1903_p9 = scmp.lt.s32.totalorder %s2310_s20, %s1901_s13  ;;  %p1904_p1 = scmp.lt.s32.totalorder %s1902_s22, %s1896_s27 }
 0x296   : > { %p1899_p5 = pneg %p1898_p0 }
 0x297   : > { %p1905_p2 = por %p1904_p1, %p1903_p9 }
 0x299   : > { %p1906_p3 = pnand %p1905_p2, %p1899_p5 }
 0x29b   : > { %1909 = shalt.err (!%p1906_p3)
}
 0x29c   : > { %s1910_s8 = scalar_lea.hbm %s2324_s14, 256  ;;  %s1914_s30 = scalar_lea.hbm %s2448_s5, 512 }
 0x29d   : > { %p1911_p7 = scmp.ne.s32.totalorder %s2324_s14, %s1910_s8  ;;  %p1915_p6 = scmp.lt.u32.totalorder %s2324_s14, %s2448_s5 }
 0x29e   : > { %p1916_p8 = scmp.lt.u32.totalorder %s1914_s30, %s1910_s8  ;;  %p1918_p11 = scmp.lt.u32.totalorder %s1910_s8, %s2324_s14 }
 0x29f   : > { %p1912_p4 = pnand %p1911_p7, %p2161_p10 }
 0x2a0   : > { %p1917_p12 = por %p1916_p8, %p1915_p6 }
 0x2a1   : > { %p1913_p13 = pneg %p1912_p4 }
 0x2a2   : > { %p1919_p0 = por %p1918_p11, %p1917_p12 }
 0x2a4   : > { %p1920_p5 = pnand %p1919_p0, %p1913_p13 }
 0x2a6   : > { %1923 = shalt.err (!%p1920_p5)
}
 0x2a7   : > { %1579 = dma.vmem_to_hbm [thread:$0]  (%p2161_p10), %s2310_s20, 256, %s2324_s14, %s1208_s18, %s2023_s0, %s2023_s0, %s2024_s11   ;;  %v544_v49 = vsub.s32 4, %v2261_v28  ;;  %v548_v50 = vsub.s32 5, %v2261_v28 }
 0x2a8   : > { %s352_s17 = scalar_lea.vmem [#allocation10], %s2299_s12  ;;  %s2391_s18 = scalar_lea.hbm %s2450_s7, %s2308_s3 }
 0x2a9   : > { %v545_v53 = vrot.slane %v2292_v21, %v544_v49  ;;  %v549_v45 = vrot.slane %v2292_v21, %v548_v50  ;;  %s1272_s27 = sshll.u32 %s352_s17, 4  ;;  %s2026_s12 = smov [#allocation10]   ;;  %s2385_s27 = int_to_ptr.vmem [resolvable:$true] %s1272_s27 }
 0x2aa   : > { %s1924_s13 = scalar_lea.vmem %s2385_s27, 256  ;;  %s1928_s22 = sshll.u32 %s2026_s12, 4  ;;  %s1929_s22 = int_to_ptr.vmem [resolvable:$false] %s1928_s22 }
 0x2ab   : > { %p1925_p9 = scmp.ne.s32.totalorder %s2385_s27, %s1924_s13  ;;  %s1930_s8 = scalar_lea.vmem %s1929_s22, 512 }
 0x2ac   : > { %p1931_p3 = scmp.lt.s32.totalorder %s2385_s27, %s1929_s22  ;;  %p1932_p7 = scmp.lt.s32.totalorder %s1930_s8, %s1924_s13 }
 0x2ad   : > { %p1926_p1 = pnand %p1925_p9, %p2161_p10 }
 0x2ae   : > { %p1933_p4 = por %p1932_p7, %p1931_p3 }
 0x2af   : > { %p1927_p2 = pneg %p1926_p1 }
 0x2b1   : > { %p1934_p13 = pnand %p1933_p4, %p1927_p2 }
 0x2ba   : > { %v1156_v54 = vpop.f32.mrb[4].mxu0 }
 0x2bb   : > { %v1157_v55 = vadd.f32 %v1156_v54, %v545_v53  ;;  %v1158_v56 = vpop.f32.mrb[5].mxu0 }
 0x2bc   : > { %v1159_v51 = vadd.f32 %v1158_v56, %v549_v45  ;;  %v1160_v52 = vpop.f32.mrb[6].mxu0 }
 0x2bd   : > { %v1161_v57 = vadd.f32 %v1160_v52, %v545_v53  ;;  %v1162_v58 = vpop.f32.mrb[7].mxu0 }
 0x2be   : > { %v1568_v59 = vpack.c.bf16 %v1159_v51, %v1157_v55  ;;  %v1163_v60 = vadd.f32 %v1162_v58, %v549_v45 }
 0x2c0   : > { %1205 = vst [vmem:[%s352_s17] sm:$0xff] %v1568_v59  ;;  %v1569_v28 = vpack.c.bf16 %v1163_v60, %v1161_v57 }
 0x2c2   : > { %1206 = vst [vmem:[%s352_s17 + $0x8] sm:$0xff] %v1569_v28 }
 0x2c3   : > { %1937 = shalt.err (!%p1934_p13)
}
 0x2c4   : > { %s1938_s3 = scalar_lea.hbm %s2391_s18, 256  ;;  %s1942_s30 = scalar_lea.hbm %s2450_s7, 512 }
 0x2c5   : > { %p1939_p6 = scmp.ne.s32.totalorder %s2391_s18, %s1938_s3  ;;  %p1943_p11 = scmp.lt.u32.totalorder %s2391_s18, %s2450_s7 }
 0x2c6   : > { %p1944_p0 = scmp.lt.u32.totalorder %s1942_s30, %s1938_s3  ;;  %p1946_p9 = scmp.lt.u32.totalorder %s1938_s3, %s2391_s18 }
 0x2c7   : > { %p1940_p8 = pnand %p1939_p6, %p2161_p10 }
 0x2c8   : > { %p1945_p5 = por %p1944_p0, %p1943_p11 }
 0x2c9   : > { %p1941_p12 = pneg %p1940_p8 }
 0x2ca   : > { %p1947_p1 = por %p1946_p9, %p1945_p5 }
 0x2cc   : > { %p1948_p2 = pnand %p1947_p1, %p1941_p12 }
 0x2ce   : > { %1951 = shalt.err (!%p1948_p2)
}
 0x2cf   : > { %1581 = dma.vmem_to_hbm [thread:$0]  (%p2161_p10), %s2385_s27, 256, %s2391_s18, %s2326_s19, %s2023_s0, %s2023_s0, %s2024_s11  }
 0x2d0 PF: > { %s1287_s17 = sand.u32 1, %s1994_s24   ;;  %p2475_p3 = scmp.ne.s32.totalorder %s2460_s10, 0 }
 0x2d1   : > { %p2476_p7 = scmp.ge.s32.totalorder %s2014_s29, 2  ;;  %s1288_s20 = scalar_lea.sflag [#allocation4], %s1287_s17 }
 0x2d3   : > { %p1594_p4 = pnand %p2476_p7, %p2475_p3 }
 0x2d5   : > { %1985 = dma.done.wait (!%p1594_p4), %s1288_s20, 256  }
 0x2d6   : > { %1987 = vsyncadd (!%p1594_p4), %s1288_s20, 4294967040  ;;  %s2477_s21 = sadd.s32 4294967294, %s2014_s29  }
 0x2d7   : > { %s1296_s14 = sand.u32 1, %s2477_s21  }
 0x2d8   : > { %s1297_s13 = scalar_lea.sflag [#allocation9], %s1296_s14 }
 0x2d9   : > { %1989 = dma.done.wait (!%p1594_p4), %s1297_s13, 512  }
 0x2da   : > { %1991 = vsyncadd (!%p1594_p4), %s1297_s13, 4294966784  ;;  %s28_s29 = sadd.s32 1, %s2014_s29   ;;  %s2478_s24 = smov %s1998_s25 }
 0x2db   : > { %p25_p10 = scmp.ge.s32.totalorder %s28_s29, 4   ;;  %s2479_s25 = smov %s2002_s26 }
 0x2dc   : > { %s2480_s26 = smov %s2170_s23  ;;  %s2481_s27 = smov %s2010_s28 }
 0x2dd   : > { %s2482_s28 = smov %s2484_s15  ;;  %27 = sbr.rel (!%p25_p10) target bundleno = 14 (0xe), region = 121 }
 0x2e4   :  { %1311 = vsyncpa [#allocation3], 1 }
 0x2e5   :  { %1313 = vsyncpa [#allocation3 + $0x1], 1 }
 0x2e6   :  { %1314 = vsyncpa [#allocation6], 1 }
 0x2e7   :  { %1315 = vsyncpa [#allocation4], 1 }
 0x2e8   :  { %1317 = vsyncpa [#allocation4 + $0x1], 1 }
 0x2e9   :  { %1318 = vsyncpa [#allocation9], 1 }
 0x2ea   :  { %1320 = vsyncpa [#allocation9 + $0x1], 1 }

// kernel: tpu_custom_call.1
= control target key start
LH: loop header
LB: loop body
LE: loop exit
PB: predicated region body
PF: predicated region fallthrough
CT: control target
= control target key end

     0   :  { %s2443_s0 = inlined_call_operand.hbm [shape: f32[2,16,256], index: 0, kind: input, shape index: {}]   ;;  %s2444_s1 = inlined_call_operand.vmem [shape: f32[1,256], index: 1, kind: input, shape index: {}]   ;;  %s2445_s2 = inlined_call_operand.vmem [shape: f32[1,256], index: 2, kind: input, shape index: {}]   ;;  %s2446_s3 = inlined_call_operand.hbm [shape: bf16[256,768], index: 3, kind: input, shape index: {}]   ;;  %s2447_s4 = inlined_call_operand.vmem [shape: f32[1,768], index: 4, kind: input, shape index: {}]   ;;  %s2448_s5 = inlined_call_operand.hbm [shape: bf16[2,16,256], index: 5, kind: output, shape index: {0}]   ;;  %s2449_s6 = inlined_call_operand.hbm [shape: bf16[2,16,256], index: 6, kind: output, shape index: {1}]   ;;  %s2450_s7 = inlined_call_operand.hbm [shape: bf16[2,16,256], index: 7, kind: output, shape index: {2}]  }
   0x1   :  { %2455 = sst [smem:[#allocation15_spill]] %s2443_s0 }
   0x2   :  { %2456 = sst [smem:[#allocation16_spill]] %s2444_s1 }
   0x3   :  { %2457 = sst [smem:[#allocation17_spill]] %s2445_s2 }
   0x4   :  { %2458 = sst [smem:[#allocation18_spill]] %s2446_s3 }
   0x5   :  { %13 = vsyncpa [#allocation3], 0 }
   0x6   :  { %15 = vsyncpa [#allocation3 + $0x1], 0 }
   0x7   :  { %16 = vsyncpa [#allocation6], 0 }
   0x8   :  { %17 = vsyncpa [#allocation4], 0 }
   0x9   :  { %19 = vsyncpa [#allocation4 + $0x1], 0 }
   0xa   :  { %20 = vsyncpa [#allocation9], 0 }
   0xb   :  { %22 = vsyncpa [#allocation9 + $0x1], 0  ;;  %s2067_s24 = smov 0   ;;  %s2069_s25 = smov 0  }
   0xc   :  { %s2071_s26 = smov 0   ;;  %s2073_s27 = smov 0  }
   0xd   :  { %s2075_s28 = smov 0   ;;  %s2077_s29 = smov 0  }
   0xe LB: > { %s2098_s30 = sadd.s32 4294967295, %s2014_s29   ;;  %s2454_s8 = sadd.s32 4294967294, %s2014_s29   ;;  %s2014_s29 = sphi %s2077_s29, %s28_s29   ;;  %s2010_s28 = sphi %s2075_s28, %s2482_s28   ;;  %s2006_s27 = sphi %s2073_s27, %s2481_s27   ;;  %s2002_s26 = sphi %s2071_s26, %s2480_s26   ;;  %s1998_s25 = sphi %s2069_s25, %s2479_s25   ;;  %s1994_s24 = sphi %s2067_s24, %s2478_s24  }
   0xf   : > { %p62_p0 = scmp.ne.s32.totalorder %s1998_s25, %s1994_s24  ;;  %p2451_p1 = scmp.eq.s32.totalorder %s2098_s30, 0 }
  0x10   : > { %p178_p3 = scmp.eq.s32.totalorder %s2454_s8, 1  ;;  %p1438_p5 = scmp.ge.s32.totalorder %s2014_s29, 1 }
  0x11   : > { %p2109_p4 = por %p2451_p1, %p62_p0  ;;  %p241_p7 = scmp.lt.s32.totalorder %s2014_s29, 3 }
  0x12   : > { %p2114_p6 = por %p178_p3, %p62_p0  ;;  %s2016_s12 = smov [#allocation5]  }
  0x13   : > { %s2459_s9 = scalar_select %p2109_p4, 1, 0 }
  0x14   : > { %s2460_s10 = scalar_select %p2114_p6, 1, 0 }
  0x15   : > { %p2119_p8 = pnand %p1438_p5, %p241_p7  ;;  %s259_s13 = sshll.u32 %s2016_s12, 4  ;;  %s260_s13 = int_to_ptr.vmem [resolvable:$true] %s259_s13 }
  0x16   : > { %s40_s15 = sadd.s32 1, %s2010_s28  ;;  %s2463_s3 = sld [smem:[#allocation18_spill]] }
  0x17   : > { %s2461_s11 = scalar_select %p2119_p8, 1, 0 }
  0x18   : > { %p1585_p9 = pneg %p2119_p8 }
  0x1a   : > { %p2128_p11 = pnand %p1585_p9, %p2451_p1 }
  0x1c   : > { %s1810_s18 = scalar_lea.hbm %s2463_s3, 12288  ;;  %p1812_p13 = pneg %p2128_p11 }
  0x1d   : > { %p1811_p12 = scmp.ne.s32.totalorder %s2463_s3, %s1810_s18  ;;  %p1817_p5 = scmp.lt.u32.totalorder %s1810_s18, %s2463_s3 }
  0x1f   : > { %p1813_p0 = pnand %p1812_p13, %p1811_p12 }
  0x21   : > { %p1814_p3 = pneg %p1813_p0 }
  0x23   : > { %p1819_p7 = pnand %p1817_p5, %p1814_p3 }
  0x25   : > { %1822 = shalt.err (!%p1819_p7)
}
  0x26   : > { %s1823_s23 = scalar_lea.vmem %s260_s13, 12288  ;;  %p1831_p2 = scmp.lt.s32.totalorder %s260_s13, %s260_s13 }
  0x27   : > { %p1824_p9 = scmp.ne.s32.totalorder %s260_s13, %s1823_s23  ;;  %p1832_p6 = scmp.lt.s32.totalorder %s1823_s23, %s1823_s23 }
  0x29   : > { %p1826_p10 = pnand %p1824_p9, %p1812_p13  ;;  %p1833_p4 = por %p1832_p6, %p1831_p2 }
  0x2b   : > { %p1827_p1 = pneg %p1826_p10 }
  0x2d   : > { %p1834_p8 = pnand %p1833_p4, %p1827_p1 }
  0x2f   : > { %1837 = shalt.err (!%p1834_p8)
}
  0x30   : > { %s2017_s12 = smov 384   ;;  %s2018_s16 = smov 24  }
  0x31   : > { %1588 = dma.hbm_to_vmem [thread:$0]  (!%p2128_p11), %s2463_s3, 12288, %s260_s13, [#allocation6], %s2017_s12, %s2017_s12, %s2018_s16  }
  0x32   : > { %p42_p1 = scmp.ge.s32.totalorder %s40_s15, 2  ;;  %s49_s19 = sadd.s32 1, %s2002_s26 }
  0x33   : > { %p56_p2 = scmp.ne.s32.totalorder %s2002_s26, %s1998_s25  ;;  %p57_p4 = scmp.eq.s32.totalorder %s2014_s29, 0 }
  0x34   : > { %s2484_s15 = smov (%p42_p1, %s40_s15), 0  ;;  %p2465_p8 = scmp.eq.s32.totalorder %s2098_s30, 1 }
  0x35   : > { %p2155_p6 = por %p57_p4, %p56_p2  ;;  %s44_s14 = ssub.s32 %s2010_s28, %s2484_s15 }
  0x36   : > { %p2161_p10 = por %p2465_p8, %p56_p2  ;;  %p1604_p12 = scmp.lt.s32.totalorder %s2014_s29, 2 }
  0x37   : > { %p47_p11 = scmp.eq.s32.totalorder %s44_s14, 0  ;;  %s276_s13 = sand.u32 1, %s2002_s26  }
  0x38   : > { %s1441_s22 = sshll.u32 %s276_s13, 5  ;;  %s1563_s12 = sshll.u32 %s2010_s28, 9 }
  0x39   : > { %s2170_s23 = scalar_select %p47_p11, %s2002_s26, %s49_s19  }
  0x3a   : > { %s2467_s0 = sld [smem:[#allocation15_spill]]  ;;  %s280_s8 = scalar_lea.vmem [#allocation2], %s1441_s22 }
  0x3b   : > { %s290_s3 = sshll.u32 %s280_s8, 4  ;;  %p2182_p13 = pnand %p1604_p12, %p2155_p6  ;;  %s2178_s3 = int_to_ptr.vmem [resolvable:$true] %s290_s3 }
  0x3c   : > { %s2186_s19 = scalar_lea.sflag [#allocation3], %s276_s13 }
  0x3d   : > { %p1840_p3 = pneg %p2182_p13 }
  0x40   : > { %s2176_s18 = scalar_lea.hbm %s2467_s0, %s1563_s12  ;;  %s1843_s20 = scalar_lea.hbm %s2467_s0, 1024 }
  0x41   : > { %s1838_s16 = scalar_lea.hbm %s2176_s18, 512  ;;  %p1844_p9 = scmp.lt.u32.totalorder %s2176_s18, %s2467_s0 }
  0x42   : > { %p1839_p0 = scmp.ne.s32.totalorder %s2176_s18, %s1838_s16  ;;  %p1845_p1 = scmp.lt.u32.totalorder %s1843_s20, %s1838_s16 }
  0x43   : > { %p1847_p4 = scmp.lt.u32.totalorder %s1838_s16, %s2176_s18 }
  0x44   : > { %p1841_p5 = pnand %p1840_p3, %p1839_p0  ;;  %p1846_p2 = por %p1845_p1, %p1844_p9 }
  0x46   : > { %p1842_p7 = pneg %p1841_p5  ;;  %p1848_p6 = por %p1847_p4, %p1846_p2 }
  0x48   : > { %p1849_p8 = pnand %p1848_p6, %p1842_p7 }
  0x4a   : > { %1852 = shalt.err (!%p1849_p8)
}
  0x4b   : > { %s1853_s13 = scalar_lea.vmem %s2178_s3, 512  ;;  %s2019_s8 = smov [#allocation2]  }
  0x4c   : > { %p1854_p12 = scmp.ne.s32.totalorder %s2178_s3, %s1853_s13  ;;  %s1858_s22 = sshll.u32 %s2019_s8, 4  ;;  %s1859_s22 = int_to_ptr.vmem [resolvable:$false] %s1858_s22 }
  0x4d   : > { %s1860_s12 = scalar_lea.vmem %s1859_s22, 1024  ;;  %p1861_p5 = scmp.lt.s32.totalorder %s2178_s3, %s1859_s22 }
  0x4e   : > { %p1856_p11 = pnand %p1854_p12, %p1840_p3  ;;  %p1862_p9 = scmp.lt.s32.totalorder %s1860_s12, %s1853_s13 }
  0x50   : > { %p1857_p0 = pneg %p1856_p11  ;;  %p1863_p1 = por %p1862_p9, %p1861_p5 }
  0x52   : > { %p1864_p2 = pnand %p1863_p1, %p1857_p0 }
  0x54   : > { %1867 = shalt.err (!%p1864_p2)
}
  0x55   : > { %s2020_s16 = smov 256   ;;  %s2021_s20 = smov 16  }
  0x56   : > { %1592 = dma.hbm_to_vmem [thread:$0]  (!%p2182_p13), %s2176_s18, 512, %s2178_s3, %s2186_s19, %s2020_s16, %s2020_s16, %s2021_s20  }
  0x57   : > { %p2469_p3 = scmp.ne.s32.totalorder %s2461_s11, 0 }
  0x58   : > { %s2217_s17 = sand.u32 (!%p2469_p3), 1, %s1998_s25   ;;  %p2470_p7 = scmp.ne.s32.totalorder (!%p2469_p3), %s2459_s9, 0 }
  0x59   : > { %302 = sbr.rel (%p2469_p3) target bundleno = 720 (0x2d0), region = 40  ;;  %s1445_s13 = sshll.u32 (!%p2469_p3), %s2217_s17, 5 }
  0x5a   : > { %s305_s8 = scalar_lea.sflag (!%p2469_p3), [#allocation3], %s2217_s17  ;;  %s308_s22 = scalar_lea.vmem (!%p2469_p3), [#allocation2], %s1445_s13 }
  0x60   : > { %1977 = dma.done.wait (%p2470_p7), %s305_s8, 512  }
  0x61   : > { %1979 = vsyncadd (%p2470_p7), %s305_s8, 4294966784  ;;  %p2471_p4 = scmp.eq.s32.totalorder %s2098_s30, 0 }
  0x63   : > { %1981 = dma.done.wait (%p2471_p4), [#allocation6], 12288   ;;  %p2472_p13 = pmov %p2471_p4 }
  0x64   : > { %v2229_v0 = vld [vmem:[%s308_s22] sm:$0xff]  ;;  %v2231_v1 = vld [vmem:[%s308_s22 + $0x8] sm:$0xff]  ;;  %v2233_v2 = vld [vmem:[%s308_s22 + $0x10] sm:$0xff]  ;;  %s2473_s1 = sld [smem:[#allocation16_spill]]  ;;  %s2474_s2 = sld [smem:[#allocation17_spill]] }
  0x65   : > { %1983 = vsyncadd (%p2472_p13), [#allocation6], 4294955008  ;;  %v361_v3 = vadd.f32 %v2231_v1, %v2229_v0  ;;  %v2237_v4 = vld [vmem:[%s308_s22 + $0x18] sm:$0xff]  ;;  %v1665_v8 = vld [vmem:[#allocation5 + $0xc] ss:$24 sps:$4 sm:$0xff]   ;;  %s2299_s12 = sshll.u32 %s2217_s17, 4 }
  0x66   : > { %v364_v5 = vadd.f32 %v2237_v4, %v2233_v2  ;;  %v1662_v6 = vld [vmem:[#allocation5 + $0x4] ss:$24 sps:$4 sm:$0xff]   ;;  %v1664_v7 = vld [vmem:[#allocation5] ss:$24 sps:$4 sm:$0xff]   ;;  %v1668_v10 = vld [vmem:[#allocation5 + $0x34] ss:$24 sps:$4 sm:$0xff]   ;;  %1079 = vmatprep.subr.bf16.mxu1 %v1665_v8 }
  0x67   : > { %362 = vadd.xlane.f32.xlu0 %v361_v3  ;;  %v1667_v9 = vld [vmem:[#allocation5 + $0x8] ss:$24 sps:$4 sm:$0xff]   ;;  %1036 = vmatprep.subr.bf16.mxu0 %v1662_v6  ;;  %v1671_v11 = vld [vmem:[#allocation5 + $0x3c] ss:$24 sps:$4 sm:$0xff]   ;;  %v1673_v13 = vld [vmem:[#allocation5 + $0x38] ss:$24 sps:$4 sm:$0xff]  }
  0x68   : > { %1037 = vmatpush1.bf16.msra.mxu0 %v1664_v7  ;;  %1080 = vmatpush1.bf16.msra.mxu1 %v1667_v9  ;;  %v1670_v12 = vld [vmem:[#allocation5 + $0x30] ss:$24 sps:$4 sm:$0xff]   ;;  %v1674_v14 = vld [vmem:[#allocation5 + $0x64] ss:$24 sps:$4 sm:$0xff]   ;;  %v1676_v16 = vld [vmem:[#allocation5 + $0x60] ss:$24 sps:$4 sm:$0xff]  }
  0x69   : > { %1038 = vmatprep.subr.bf16.mxu0 %v1668_v10  ;;  %1081 = vmatprep.subr.bf16.mxu1 %v1671_v11  ;;  %v1677_v15 = vld [vmem:[#allocation5 + $0x6c] ss:$24 sps:$4 sm:$0xff]   ;;  %v1679_v17 = vld [vmem:[#allocation5 + $0x68] ss:$24 sps:$4 sm:$0xff]   ;;  %v1683_v19 = vld [vmem:[#allocation5 + $0x9c] ss:$24 sps:$4 sm:$0xff]  }
  0x6a   : > { %v1680_v18 = vld [vmem:[#allocation5 + $0x94] ss:$24 sps:$4 sm:$0xff]   ;;  %v1682_v20 = vld [vmem:[#allocation5 + $0x90] ss:$24 sps:$4 sm:$0xff]   ;;  %v1686_v22 = vld [vmem:[#allocation5 + $0xc4] ss:$24 sps:$4 sm:$0xff]  }
  0x6b   : > { %365 = vadd.xlane.f32.xlu0 %v364_v5  ;;  %v1685_v21 = vld [vmem:[#allocation5 + $0x98] ss:$24 sps:$4 sm:$0xff]   ;;  %v1689_v23 = vld [vmem:[#allocation5 + $0xcc] ss:$24 sps:$4 sm:$0xff]   ;;  %v1691_v25 = vld [vmem:[#allocation5 + $0xc8] ss:$24 sps:$4 sm:$0xff]  }
  0x6c   : > { %1039 = vmatpush1.bf16.msra.mxu0 %v1670_v12  ;;  %1082 = vmatpush1.bf16.msra.mxu1 %v1673_v13  ;;  %v1688_v24 = vld [vmem:[#allocation5 + $0xc0] ss:$24 sps:$4 sm:$0xff]   ;;  %v1692_v26 = vld [vmem:[#allocation5 + $0xf4] ss:$24 sps:$4 sm:$0xff]   ;;  %v1694_v28 = vld [vmem:[#allocation5 + $0xf0] ss:$24 sps:$4 sm:$0xff]  }
  0x6d   : > { %1040 = vmatprep.subr.bf16.mxu0 %v1674_v14  ;;  %1083 = vmatprep.subr.bf16.mxu1 %v1677_v15  ;;  %v1695_v27 = vld [vmem:[#allocation5 + $0xfc] ss:$24 sps:$4 sm:$0xff]   ;;  %v1697_v29 = vld [vmem:[#allocation5 + $0xf8] ss:$24 sps:$4 sm:$0xff]   ;;  %v1701_v31 = vld [vmem:[#allocation5 + $0x12c] ss:$24 sps:$4 sm:$0xff]  }
  0x6e   : > { %v1698_v30 = vld [vmem:[#allocation5 + $0x124] ss:$24 sps:$4 sm:$0xff]   ;;  %v1700_v32 = vld [vmem:[#allocation5 + $0x120] ss:$24 sps:$4 sm:$0xff]   ;;  %v1704_v34 = vld [vmem:[#allocation5 + $0x154] ss:$24 sps:$4 sm:$0xff]  }
  0x6f   : > { %v1703_v33 = vld [vmem:[#allocation5 + $0x128] ss:$24 sps:$4 sm:$0xff]   ;;  %v1707_v35 = vld [vmem:[#allocation5 + $0x15c] ss:$24 sps:$4 sm:$0xff]   ;;  %v1709_v37 = vld [vmem:[#allocation5 + $0x158] ss:$24 sps:$4 sm:$0xff]  }
  0x70   : > { %1041 = vmatpush1.bf16.msra.mxu0 %v1676_v16  ;;  %1084 = vmatpush1.bf16.msra.mxu1 %v1679_v17  ;;  %v1706_v36 = vld [vmem:[#allocation5 + $0x150] ss:$24 sps:$4 sm:$0xff]   ;;  %v1710_v38 = vld [vmem:[#allocation5 + $0x184] ss:$24 sps:$4 sm:$0xff]   ;;  %v1712_v40 = vld [vmem:[#allocation5 + $0x180] ss:$24 sps:$4 sm:$0xff]  }
  0x71   : > { %1042 = vmatprep.subr.bf16.mxu0 %v1680_v18  ;;  %1085 = vmatprep.subr.bf16.mxu1 %v1683_v19  ;;  %v1713_v39 = vld [vmem:[#allocation5 + $0x18c] ss:$24 sps:$4 sm:$0xff]   ;;  %v1715_v41 = vld [vmem:[#allocation5 + $0x188] ss:$24 sps:$4 sm:$0xff]   ;;  %v1719_v58 = vld [vmem:[#allocation5 + $0x1bc] ss:$24 sps:$4 sm:$0xff]  }
  0x72   : > { %v1716_v42 = vld [vmem:[#allocation5 + $0x1b4] ss:$24 sps:$4 sm:$0xff]   ;;  %v1718_v57 = vld [vmem:[#allocation5 + $0x1b0] ss:$24 sps:$4 sm:$0xff]   ;;  %v1722_v60 = vld [vmem:[#allocation5 + $0x1e4] ss:$24 sps:$4 sm:$0xff]  }
  0x73   : > { %v1721_v59 = vld [vmem:[#allocation5 + $0x1b8] ss:$24 sps:$4 sm:$0xff]   ;;  %v1725_v62 = vld [vmem:[#allocation5 + $0x1ec] ss:$24 sps:$4 sm:$0xff]   ;;  %v1727_v63 = vld [vmem:[#allocation5 + $0x1e8] ss:$24 sps:$4 sm:$0xff]  }
  0x74   : > { %1043 = vmatpush1.bf16.msra.mxu0 %v1682_v20  ;;  %1086 = vmatpush1.bf16.msra.mxu1 %v1685_v21  ;;  %v1724_v61 = vld [vmem:[#allocation5 + $0x1e0] ss:$24 sps:$4 sm:$0xff]   ;;  %v1737_v6 = vld [vmem:[#allocation5 + $0x24c] ss:$24 sps:$4 sm:$0xff]   ;;  %v1743_v9 = vld [vmem:[#allocation5 + $0x27c] ss:$24 sps:$4 sm:$0xff]  }
  0x75   : > { %1044 = vmatprep.subr.bf16.mxu0 %v1686_v22  ;;  %1087 = vmatprep.subr.bf16.mxu1 %v1689_v23  ;;  %v1733_v3 = vld [vmem:[#allocation5 + $0x218] ss:$24 sps:$4 sm:$0xff]   ;;  %v1739_v7 = vld [vmem:[#allocation5 + $0x248] ss:$24 sps:$4 sm:$0xff]   ;;  %v1740_v8 = vld [vmem:[#allocation5 + $0x274] ss:$24 sps:$4 sm:$0xff]  }
  0x76   : > { %v1736_v5 = vld [vmem:[#allocation5 + $0x240] ss:$24 sps:$4 sm:$0xff]   ;;  %v1742_v10 = vld [vmem:[#allocation5 + $0x270] ss:$24 sps:$4 sm:$0xff]   ;;  %v1746_v12 = vld [vmem:[#allocation5 + $0x2a4] ss:$24 sps:$4 sm:$0xff]  }
  0x77   : > { %v1745_v11 = vld [vmem:[#allocation5 + $0x278] ss:$24 sps:$4 sm:$0xff]   ;;  %v1749_v13 = vld [vmem:[#allocation5 + $0x2ac] ss:$24 sps:$4 sm:$0xff]   ;;  %v1751_v15 = vld [vmem:[#allocation5 + $0x2a8] ss:$24 sps:$4 sm:$0xff]  }
  0x78   : > { %1045 = vmatpush1.bf16.msra.mxu0 %v1688_v24  ;;  %1088 = vmatpush1.bf16.msra.mxu1 %v1691_v25  ;;  %v1748_v14 = vld [vmem:[#allocation5 + $0x2a0] ss:$24 sps:$4 sm:$0xff]   ;;  %v1752_v16 = vld [vmem:[#allocation5 + $0x2d4] ss:$24 sps:$4 sm:$0xff]   ;;  %v1754_v18 = vld [vmem:[#allocation5 + $0x2d0] ss:$24 sps:$4 sm:$0xff]   ;;  %v396_v25 = vlaneseq }
  0x79   : > { %1046 = vmatprep.subr.bf16.mxu0 %v1692_v26  ;;  %1089 = vmatprep.subr.bf16.mxu1 %v1695_v27  ;;  %v1755_v17 = vld [vmem:[#allocation5 + $0x2dc] ss:$24 sps:$4 sm:$0xff]   ;;  %v1757_v19 = vld [vmem:[#allocation5 + $0x2d8] ss:$24 sps:$4 sm:$0xff]   ;;  %s338_s16 = scalar_lea.vmem [#allocation7], %s2299_s12  ;;  %s345_s13 = scalar_lea.vmem [#allocation8], %s2299_s12 }
  0x7a   : > { %v1760_v20 = vld [vmem:[#allocation5 + $0x14] ss:$24 sps:$4 sm:$0xff]   ;;  %s1234_s20 = sshll.u32 %s338_s16, 4  ;;  %s1253_s8 = sshll.u32 %s345_s13, 4  ;;  %s2310_s20 = int_to_ptr.vmem [resolvable:$true] %s1234_s20  ;;  %s2312_s8 = int_to_ptr.vmem [resolvable:$true] %s1253_s8 }
  0x7b   : > { %s1212_s22 = sand.u32 1, %s2098_s30   ;;  %s2308_s3 = sshll.u32 %s2006_s27, 8 }
  0x7c   : > { %1047 = vmatpush1.bf16.msra.mxu0 %v1694_v28  ;;  %1090 = vmatpush1.bf16.msra.mxu1 %v1697_v29  ;;  %v2261_v28 = vshrl.u32 %v396_v25, 7  ;;  %s2318_s9 = scalar_lea.hbm %s2449_s6, %s2308_s3  ;;  %s2324_s14 = scalar_lea.hbm %s2448_s5, %s2308_s3 }
  0x7d   : > { %1048 = vmatprep.subr.bf16.mxu0 %v1698_v30  ;;  %1091 = vmatprep.subr.bf16.mxu1 %v1701_v31  ;;  %v394_v31 = vld [vmem:[%s2473_s1] sm:$0x3]  ;;  %s2326_s19 = scalar_lea.sflag [#allocation9], %s1212_s22  ;;  %s1868_s0 = scalar_lea.vmem %s2312_s8, 256 }
  0x7e   : > { %v2264_v29 = vsub.s32 1, %v2261_v28  ;;  %v2267_v30 = vsub.s32 0, %v2261_v28  ;;  %p1869_p6 = scmp.ne.s32.totalorder %s2312_s8, %s1868_s0  ;;  %s2022_s1 = smov [#allocation8]  }
  0x80   : > { %1049 = vmatpush1.bf16.msra.mxu0 %v1700_v32  ;;  %1092 = vmatpush1.bf16.msra.mxu1 %v1703_v33  ;;  %p1870_p8 = pnand %p1869_p6, %p2161_p10 }
  0x81   : > { %1050 = vmatprep.subr.bf16.mxu0 %v1704_v34  ;;  %1093 = vmatprep.subr.bf16.mxu1 %v1707_v35  ;;  %v403_v34 = vrot.slane %v394_v31, %v2264_v29  ;;  %v410_v35 = vld [vmem:[%s2474_s2] sm:$0x3]  ;;  %s1872_s2 = sshll.u32 %s2022_s1, 4  ;;  %s1873_s2 = int_to_ptr.vmem [resolvable:$false] %s1872_s2 }
  0x82   : > { %p1871_p12 = pneg %p1870_p8  ;;  %s1874_s27 = scalar_lea.vmem %s1873_s2, 512 }
  0x83   : > { %p1875_p11 = scmp.lt.s32.totalorder %s2312_s8, %s1873_s2  ;;  %p1876_p0 = scmp.lt.s32.totalorder %s1874_s27, %s1868_s0 }
  0x84   : > { %1051 = vmatpush1.bf16.msra.mxu0 %v1706_v36  ;;  %1094 = vmatpush1.bf16.msra.mxu1 %v1709_v37  ;;  %v399_v37 = vrot.slane %v394_v31, %v2267_v30 }
  0x85   : > { %1052 = vmatprep.subr.bf16.mxu0 %v1710_v38  ;;  %1095 = vmatprep.subr.bf16.mxu1 %v1713_v39  ;;  %v419_v39 = vrot.slane %v410_v35, %v2264_v29  ;;  %p1877_p5 = por %p1876_p0, %p1875_p11 }
  0x87   : > { %p1878_p9 = pnand %p1877_p5, %p1871_p12 }
  0x88   : > { %1053 = vmatpush1.bf16.msra.mxu0 %v1712_v40  ;;  %1096 = vmatpush1.bf16.msra.mxu1 %v1715_v41  ;;  %v415_v40 = vrot.slane %v410_v35, %v2267_v30 }
  0x89   : > { %1054 = vmatprep.subr.bf16.mxu0 %v1716_v42  ;;  %1097 = vmatprep.subr.bf16.mxu1 %v1719_v58  ;;  %v1769_v58 = vld [vmem:[#allocation5 + $0xa4] ss:$24 sps:$4 sm:$0xff]  }
  0x8c   : > { %1055 = vmatpush1.bf16.msra.mxu0 %v1718_v57  ;;  %1098 = vmatpush1.bf16.msra.mxu1 %v1721_v59  ;;  %v1764_v57 = vld [vmem:[#allocation5 + $0x70] ss:$24 sps:$4 sm:$0xff]   ;;  %v1767_v59 = vld [vmem:[#allocation5 + $0xa0] ss:$24 sps:$4 sm:$0xff]  }
  0x8d   : > { %1056 = vmatprep.subr.bf16.mxu0 %v1722_v60  ;;  %1099 = vmatprep.subr.bf16.mxu1 %v1725_v62  ;;  %v1772_v60 = vld [vmem:[#allocation5 + $0xd4] ss:$24 sps:$4 sm:$0xff]   ;;  %v1775_v62 = vld [vmem:[#allocation5 + $0x104] ss:$24 sps:$4 sm:$0xff]  }
  0x90   : > { %1057 = vmatpush1.bf16.msra.mxu0 %v1724_v61  ;;  %1100 = vmatpush1.bf16.msra.mxu1 %v1727_v63  ;;  %v1770_v61 = vld [vmem:[#allocation5 + $0xd0] ss:$24 sps:$4 sm:$0xff]   ;;  %v1773_v63 = vld [vmem:[#allocation5 + $0x100] ss:$24 sps:$4 sm:$0xff]  }
  0xf4   : > { %v363_v43 = vpop.xlane.xlu0 %362 }
  0xf5   : > { %v368_v44 = vmul.f32 0.00390625, %v363_v43 }
  0xf7   : > { %v2242_v45 = vsub.f32 %v2229_v0, %v368_v44  ;;  %v2245_v46 = vsub.f32 %v2231_v1, %v368_v44  ;;  %v1728_v0 = vld [vmem:[#allocation5 + $0x214] ss:$24 sps:$4 sm:$0xff]   ;;  %v1730_v1 = vld [vmem:[#allocation5 + $0x210] ss:$24 sps:$4 sm:$0xff]  }
  0xf8   : > { %v366_v47 = vpop.xlane.xlu0 %365  ;;  %1058 = vmatprep.subr.bf16.mxu0 %v1728_v0  ;;  %v1778_v0 = vld [vmem:[#allocation5 + $0x134] ss:$24 sps:$4 sm:$0xff]  }
  0xf9   : > { %v369_v48 = vmul.f32 0.00390625, %v366_v47  ;;  %v374_v49 = vmul.f32 %v2242_v45, %v2242_v45  ;;  %v375_v50 = vmul.f32 %v2245_v46, %v2245_v46  ;;  %1059 = vmatpush1.bf16.msra.mxu0 %v1730_v1  ;;  %v1776_v1 = vld [vmem:[#allocation5 + $0x130] ss:$24 sps:$4 sm:$0xff]  }
  0xfb   : > { %v2252_v51 = vsub.f32 %v2233_v2, %v369_v48  ;;  %v2255_v52 = vsub.f32 %v2237_v4, %v369_v48  ;;  %v378_v53 = vadd.f32 %v375_v50, %v374_v49  ;;  %v1731_v2 = vld [vmem:[#allocation5 + $0x21c] ss:$24 sps:$4 sm:$0xff]  }
  0xfc   : > { %1101 = vmatprep.subr.bf16.mxu1 %v1731_v2  ;;  %v1734_v4 = vld [vmem:[#allocation5 + $0x244] ss:$24 sps:$4 sm:$0xff]  }
  0xfd   : > { %379 = vadd.xlane.f32.xlu1 %v378_v53  ;;  %v376_v54 = vmul.f32 %v2252_v51, %v2252_v51  ;;  %v377_v55 = vmul.f32 %v2255_v52, %v2255_v52  ;;  %1102 = vmatpush1.bf16.msra.mxu1 %v1733_v3  ;;  %v1781_v2 = vld [vmem:[#allocation5 + $0x164] ss:$24 sps:$4 sm:$0xff]   ;;  %v1779_v3 = vld [vmem:[#allocation5 + $0x160] ss:$24 sps:$4 sm:$0xff]  }
  0xfe   : > { %1060 = vmatprep.subr.bf16.mxu0 %v1734_v4  ;;  %1103 = vmatprep.subr.bf16.mxu1 %v1737_v6  ;;  %v1784_v4 = vld [vmem:[#allocation5 + $0x194] ss:$24 sps:$4 sm:$0xff]   ;;  %v1787_v6 = vld [vmem:[#allocation5 + $0x1c4] ss:$24 sps:$4 sm:$0xff]  }
  0xff   : > { %v381_v56 = vadd.f32 %v377_v55, %v376_v54  ;;  %1061 = vmatpush1.bf16.msra.mxu0 %v1736_v5  ;;  %v1758_v54 = vld [vmem:[#allocation5 + $0x10] ss:$24 sps:$4 sm:$0xff]  }
 0x100   : > { %1062 = vmatprep.subr.bf16.mxu0 %v1740_v8  ;;  %v1782_v5 = vld [vmem:[#allocation5 + $0x190] ss:$24 sps:$4 sm:$0xff]   ;;  %v1790_v8 = vld [vmem:[#allocation5 + $0x1f4] ss:$24 sps:$4 sm:$0xff]  }
 0x101   : > { %382 = vadd.xlane.f32.xlu1 %v381_v56  ;;  %1104 = vmatpush1.bf16.msra.mxu1 %v1739_v7  ;;  %v1763_v56 = vld [vmem:[#allocation5 + $0x44] ss:$24 sps:$4 sm:$0xff]   ;;  %v1785_v7 = vld [vmem:[#allocation5 + $0x1c0] ss:$24 sps:$4 sm:$0xff]  }
 0x102   : > { %1105 = vmatprep.subr.bf16.mxu1 %v1743_v9  ;;  %v1788_v9 = vld [vmem:[#allocation5 + $0x1f0] ss:$24 sps:$4 sm:$0xff]  }
 0x103   : > { %1063 = vmatpush1.bf16.msra.mxu0 %v1742_v10  ;;  %v1793_v10 = vld [vmem:[#allocation5 + $0x224] ss:$24 sps:$4 sm:$0xff]  }
 0x104   : > { %1064 = vmatprep.subr.bf16.mxu0 %v1746_v12  ;;  %v1796_v12 = vld [vmem:[#allocation5 + $0x254] ss:$24 sps:$4 sm:$0xff]  }
 0x105   : > { %1106 = vmatpush1.bf16.msra.mxu1 %v1745_v11  ;;  %v1791_v11 = vld [vmem:[#allocation5 + $0x220] ss:$24 sps:$4 sm:$0xff]  }
 0x106   : > { %1107 = vmatprep.subr.bf16.mxu1 %v1749_v13  ;;  %v1794_v13 = vld [vmem:[#allocation5 + $0x250] ss:$24 sps:$4 sm:$0xff]  }
 0x107   : > { %1065 = vmatpush1.bf16.msra.mxu0 %v1748_v14  ;;  %v1799_v14 = vld [vmem:[#allocation5 + $0x284] ss:$24 sps:$4 sm:$0xff]  }
 0x108   : > { %1066 = vmatprep.subr.bf16.mxu0 %v1752_v16  ;;  %v1802_v16 = vld [vmem:[#allocation5 + $0x2b4] ss:$24 sps:$4 sm:$0xff]  }
 0x109   : > { %1108 = vmatpush1.bf16.msra.mxu1 %v1751_v15  ;;  %v1797_v15 = vld [vmem:[#allocation5 + $0x280] ss:$24 sps:$4 sm:$0xff]  }
 0x10a   : > { %1109 = vmatprep.subr.bf16.mxu1 %v1755_v17  ;;  %v1800_v17 = vld [vmem:[#allocation5 + $0x2b0] ss:$24 sps:$4 sm:$0xff]  }
 0x10b   : > { %1067 = vmatpush1.bf16.msra.mxu0 %v1754_v18  ;;  %v1805_v18 = vld [vmem:[#allocation5 + $0x2e4] ss:$24 sps:$4 sm:$0xff]  }
 0x10c   : > { %1122 = vmatprep.subr.bf16.mxu0 %v1760_v20  ;;  %v536_v20 = vsub.s32 2, %v2261_v28 }
 0x10d   : > { %1110 = vmatpush1.bf16.msra.mxu1 %v1757_v19  ;;  %v1803_v19 = vld [vmem:[#allocation5 + $0x2e0] ss:$24 sps:$4 sm:$0xff]  }
 0x18a   : > { %v380_v21 = vpop.xlane.xlu1 %379 }
 0x18b   : > { %v384_v22 = vmul.f32 0.00390625, %v380_v21  ;;  %v2292_v21 = vld [vmem:[%s2447_s4] sm:$0x3f] }
 0x18c   : > { %v533_v25 = vrot.slane %v2292_v21, %v2264_v29 }
 0x18d   : > { %v386_v23 = vadd.f32 1e-05, %v384_v22  ;;  %v540_v22 = vsub.s32 3, %v2261_v28 }
 0x18e   : > { %v383_v24 = vpop.xlane.xlu1 %382 }
 0x18f   : > { %1806 = vrsqrt.f32 %v386_v23  ;;  %v385_v26 = vmul.f32 0.00390625, %v383_v24  ;;  %v529_v23 = vrot.slane %v2292_v21, %v2267_v30  ;;  %v537_v24 = vrot.slane %v2292_v21, %v536_v20 }
 0x191   : > { %v387_v27 = vadd.f32 1e-05, %v385_v26  ;;  %v541_v26 = vrot.slane %v2292_v21, %v540_v22 }
 0x193   : > { %1808 = vrsqrt.f32 %v387_v27 }
 0x199   : > { %v1807_v32 = vpop.eup %1806 }
 0x19a   : > { %v391_v33 = vmul.f32 %v1807_v32, %v2245_v46  ;;  %v390_v36 = vmul.f32 %v1807_v32, %v2242_v45 }
 0x19c   : > { %v407_v42 = vmul.f32 %v403_v34, %v391_v33  ;;  %v406_v44 = vmul.f32 %v399_v37, %v390_v36 }
 0x19d   : > { %v1809_v38 = vpop.eup %1808 }
 0x19e   : > { %v393_v41 = vmul.f32 %v1809_v38, %v2255_v52  ;;  %v392_v43 = vmul.f32 %v1809_v38, %v2252_v51  ;;  %v423_v48 = vadd.f32 %v419_v39, %v407_v42  ;;  %v422_v50 = vadd.f32 %v415_v40, %v406_v44  ;;  %v1761_v51 = vld [vmem:[#allocation5 + $0x40] ss:$24 sps:$4 sm:$0xff]   ;;  %v1766_v52 = vld [vmem:[#allocation5 + $0x74] ss:$24 sps:$4 sm:$0xff]  }
 0x1a0   : > { %v409_v46 = vmul.f32 %v403_v34, %v393_v41  ;;  %v408_v47 = vmul.f32 %v399_v37, %v392_v43 }
 0x1a2   : > { %v425_v49 = vadd.f32 %v419_v39, %v409_v46  ;;  %v424_v53 = vadd.f32 %v415_v40, %v408_v47 }
 0x1a4   : > { %v427_v45 = vpack.c.bf16 %v425_v49, %v423_v48  ;;  %v2283_v55 = vpack.c.bf16 %v424_v53, %v422_v50 }
 0x1a6   : > { %1068 = vmatprep.mubr.bf16.mxu0 %v427_v45  ;;  %1111 = vmatprep.mubr.bf16.mxu1 %v427_v45 }
 0x1a7   : > { %1069 = vmatmul.mubr.bf16.vlgmr.msra.gmra.mrb[0].mxu0 %v2283_v55  ;;  %1112 = vmatmul.mubr.bf16.vlgmr.msra.gmra.mrb[0].mxu1 %v2283_v55 }
 0x1a8   : > { %1123 = vmatpush1.bf16.msra.mxu0 %v1758_v54  ;;  %1154 = vmatprep.mubr.bf16.mxu0 %v427_v45 }
 0x1a9   : > { %1124 = vmatprep.subr.bf16.mxu0 %v1763_v56 }
 0x1ac   : > { %1125 = vmatpush1.bf16.msra.mxu0 %v1761_v51 }
 0x1ad   : > { %1126 = vmatprep.subr.bf16.mxu0 %v1766_v52 }
 0x1b0   : > { %1127 = vmatpush1.bf16.msra.mxu0 %v1764_v57 }
 0x1b1   : > { %1128 = vmatprep.subr.bf16.mxu0 %v1769_v58 }
 0x1b4   : > { %1129 = vmatpush1.bf16.msra.mxu0 %v1767_v59 }
 0x1b5   : > { %1130 = vmatprep.subr.bf16.mxu0 %v1772_v60 }
 0x1b8   : > { %1131 = vmatpush1.bf16.msra.mxu0 %v1770_v61 }
 0x1b9   : > { %1132 = vmatprep.subr.bf16.mxu0 %v1775_v62 }
 0x1bc   : > { %1133 = vmatpush1.bf16.msra.mxu0 %v1773_v63 }
 0x1bd   : > { %1134 = vmatprep.subr.bf16.mxu0 %v1778_v0 }
 0x1c0   : > { %1135 = vmatpush1.bf16.msra.mxu0 %v1776_v1 }
 0x1c1   : > { %1136 = vmatprep.subr.bf16.mxu0 %v1781_v2 }
 0x1c4   : > { %1137 = vmatpush1.bf16.msra.mxu0 %v1779_v3 }
 0x1c5   : > { %1138 = vmatprep.subr.bf16.mxu0 %v1784_v4 }
 0x1c8   : > { %1139 = vmatpush1.bf16.msra.mxu0 %v1782_v5 }
 0x1c9   : > { %1140 = vmatprep.subr.bf16.mxu0 %v1787_v6 }
 0x1cc   : > { %1141 = vmatpush1.bf16.msra.mxu0 %v1785_v7 }
 0x1cd   : > { %1142 = vmatprep.subr.bf16.mxu0 %v1790_v8 }
 0x1d0   : > { %1143 = vmatpush1.bf16.msra.mxu0 %v1788_v9 }
 0x1d1   : > { %1144 = vmatprep.subr.bf16.mxu0 %v1793_v10 }
 0x1d4   : > { %1145 = vmatpush1.bf16.msra.mxu0 %v1791_v11 }
 0x1d5   : > { %1146 = vmatprep.subr.bf16.mxu0 %v1796_v12 }
 0x1d8   : > { %1147 = vmatpush1.bf16.msra.mxu0 %v1794_v13 }
 0x1d9   : > { %1148 = vmatprep.subr.bf16.mxu0 %v1799_v14 }
 0x1dc   : > { %1149 = vmatpush1.bf16.msra.mxu0 %v1797_v15 }
 0x1dd   : > { %1150 = vmatprep.subr.bf16.mxu0 %v1802_v16 }
 0x1e0   : > { %1151 = vmatpush1.bf16.msra.mxu0 %v1800_v17 }
 0x1e1   : > { %1152 = vmatprep.subr.bf16.mxu0 %v1805_v18 }
 0x1e4   : > { %1153 = vmatpush1.bf16.msra.mxu0 %v1803_v19 }
 0x1e7   : > { %1155 = vmatmul.mubr.bf16.vlgmr.msra.gmra.mrb[4].mxu0 %v2283_v55 }
 0x27a   : > { %v1070_v27 = vpop.f32.mrb[0].mxu0  ;;  %v1113_v31 = vpop.f32.mrb[0].mxu1 }
 0x27b   : > { %v1071_v32 = vadd.f32 %v1070_v27, %v529_v23  ;;  %v1114_v33 = vadd.f32 %v1113_v31, %v537_v24  ;;  %v1072_v34 = vpop.f32.mrb[1].mxu0  ;;  %v1115_v30 = vpop.f32.mrb[1].mxu1 }
 0x27c   : > { %v1073_v35 = vadd.f32 %v1072_v34, %v533_v25  ;;  %v1116_v36 = vadd.f32 %v1115_v30, %v541_v26  ;;  %v1074_v37 = vpop.f32.mrb[2].mxu0  ;;  %v1117_v38 = vpop.f32.mrb[2].mxu1 }
 0x27d   : > { %v1075_v29 = vadd.f32 %v1074_v37, %v529_v23  ;;  %v1118_v39 = vadd.f32 %v1117_v38, %v537_v24  ;;  %v1076_v40 = vpop.f32.mrb[3].mxu0  ;;  %v1119_v41 = vpop.f32.mrb[3].mxu1 }
 0x27e   : > { %v1564_v42 = vpack.c.bf16 %v1073_v35, %v1071_v32  ;;  %v1566_v43 = vpack.c.bf16 %v1116_v36, %v1114_v33  ;;  %v1077_v44 = vadd.f32 %v1076_v40, %v533_v25  ;;  %v1120_v46 = vadd.f32 %v1119_v41, %v541_v26 }
 0x280   : > { %1181 = vst [vmem:[%s338_s16] sm:$0xff] %v1564_v42  ;;  %1193 = vst [vmem:[%s345_s13] sm:$0xff] %v1566_v43  ;;  %v1565_v47 = vpack.c.bf16 %v1077_v44, %v1075_v29  ;;  %v1567_v48 = vpack.c.bf16 %v1120_v46, %v1118_v39 }
 0x282   : > { %1182 = vst [vmem:[%s338_s16 + $0x8] sm:$0xff] %v1565_v47  ;;  %1194 = vst [vmem:[%s345_s13 + $0x8] sm:$0xff] %v1567_v48 }
 0x283   : > { %1881 = shalt.err (!%p1878_p9)
}
 0x284   : > { %s1882_s16 = scalar_lea.hbm %s2318_s9, 256  ;;  %s1886_s1 = scalar_lea.hbm %s2449_s6, 512 }
 0x285   : > { %p1883_p1 = scmp.ne.s32.totalorder %s2318_s9, %s1882_s16  ;;  %p1887_p7 = scmp.lt.u32.totalorder %s2318_s9, %s2449_s6 }
 0x286   : > { %p1888_p4 = scmp.lt.u32.totalorder %s1886_s1, %s1882_s16  ;;  %p1890_p6 = scmp.lt.u32.totalorder %s1882_s16, %s2318_s9 }
 0x287   : > { %p1884_p2 = pnand %p1883_p1, %p2161_p10 }
 0x288   : > { %p1889_p13 = por %p1888_p4, %p1887_p7 }
 0x289   : > { %p1885_p3 = pneg %p1884_p2 }
 0x28a   : > { %p1891_p8 = por %p1890_p6, %p1889_p13 }
 0x28c   : > { %p1892_p12 = pnand %p1891_p8, %p1885_p3 }
 0x28e   : > { %1895 = shalt.err (!%p1892_p12)
}
 0x28f   : > { %s2023_s0 = smov 128   ;;  %s2024_s11 = smov 8  }
 0x290   : > { %1580 = dma.vmem_to_hbm [thread:$0]  (%p2161_p10), %s2312_s8, 256, %s2318_s9, %s2326_s19, %s2023_s0, %s2023_s0, %s2024_s11  }
 0x291   : > { %s1208_s18 = scalar_lea.sflag [#allocation4], %s2217_s17  ;;  %s1896_s27 = scalar_lea.vmem %s2310_s20, 256 }
 0x292   : > { %p1897_p11 = scmp.ne.s32.totalorder %s2310_s20, %s1896_s27  ;;  %s2025_s16 = smov [#allocation7]  }
 0x293   : > { %s1900_s13 = sshll.u32 %s2025_s16, 4  ;;  %s1901_s13 = int_to_ptr.vmem [resolvable:$false] %s1900_s13 }
 0x294   : > { %p1898_p0 = pnand %p1897_p11, %p2161_p10  ;;  %s1902_s22 = scalar_lea.vmem %s1901_s13, 512 }
 0x295   : > { %p1903_p9 = scmp.lt.s32.totalorder %s2310_s20, %s1901_s13  ;;  %p1904_p1 = scmp.lt.s32.totalorder %s1902_s22, %s1896_s27 }
 0x296   : > { %p1899_p5 = pneg %p1898_p0 }
 0x297   : > { %p1905_p2 = por %p1904_p1, %p1903_p9 }
 0x299   : > { %p1906_p3 = pnand %p1905_p2, %p1899_p5 }
 0x29b   : > { %1909 = shalt.err (!%p1906_p3)
}
 0x29c   : > { %s1910_s8 = scalar_lea.hbm %s2324_s14, 256  ;;  %s1914_s30 = scalar_lea.hbm %s2448_s5, 512 }
 0x29d   : > { %p1911_p7 = scmp.ne.s32.totalorder %s2324_s14, %s1910_s8  ;;  %p1915_p6 = scmp.lt.u32.totalorder %s2324_s14, %s2448_s5 }
 0x29e   : > { %p1916_p8 = scmp.lt.u32.totalorder %s1914_s30, %s1910_s8  ;;  %p1918_p11 = scmp.lt.u32.totalorder %s1910_s8, %s2324_s14 }
 0x29f   : > { %p1912_p4 = pnand %p1911_p7, %p2161_p10 }
 0x2a0   : > { %p1917_p12 = por %p1916_p8, %p1915_p6 }
 0x2a1   : > { %p1913_p13 = pneg %p1912_p4 }
 0x2a2   : > { %p1919_p0 = por %p1918_p11, %p1917_p12 }
 0x2a4   : > { %p1920_p5 = pnand %p1919_p0, %p1913_p13 }
 0x2a6   : > { %1923 = shalt.err (!%p1920_p5)
}
 0x2a7   : > { %1579 = dma.vmem_to_hbm [thread:$0]  (%p2161_p10), %s2310_s20, 256, %s2324_s14, %s1208_s18, %s2023_s0, %s2023_s0, %s2024_s11   ;;  %v544_v49 = vsub.s32 4, %v2261_v28  ;;  %v548_v50 = vsub.s32 5, %v2261_v28 }
 0x2a8   : > { %s352_s17 = scalar_lea.vmem [#allocation10], %s2299_s12  ;;  %s2391_s18 = scalar_lea.hbm %s2450_s7, %s2308_s3 }
 0x2a9   : > { %v545_v53 = vrot.slane %v2292_v21, %v544_v49  ;;  %v549_v45 = vrot.slane %v2292_v21, %v548_v50  ;;  %s1272_s27 = sshll.u32 %s352_s17, 4  ;;  %s2026_s12 = smov [#allocation10]   ;;  %s2385_s27 = int_to_ptr.vmem [resolvable:$true] %s1272_s27 }
 0x2aa   : > { %s1924_s13 = scalar_lea.vmem %s2385_s27, 256  ;;  %s1928_s22 = sshll.u32 %s2026_s12, 4  ;;  %s1929_s22 = int_to_ptr.vmem [resolvable:$false] %s1928_s22 }
 0x2ab   : > { %p1925_p9 = scmp.ne.s32.totalorder %s2385_s27, %s1924_s13  ;;  %s1930_s8 = scalar_lea.vmem %s1929_s22, 512 }
 0x2ac   : > { %p1931_p3 = scmp.lt.s32.totalorder %s2385_s27, %s1929_s22  ;;  %p1932_p7 = scmp.lt.s32.totalorder %s1930_s8, %s1924_s13 }
 0x2ad   : > { %p1926_p1 = pnand %p1925_p9, %p2161_p10 }
 0x2ae   : > { %p1933_p4 = por %p1932_p7, %p1931_p3 }
 0x2af   : > { %p1927_p2 = pneg %p1926_p1 }
 0x2b1   : > { %p1934_p13 = pnand %p1933_p4, %p1927_p2 }
 0x2ba   : > { %v1156_v54 = vpop.f32.mrb[4].mxu0 }
 0x2bb   : > { %v1157_v55 = vadd.f32 %v1156_v54, %v545_v53  ;;  %v1158_v56 = vpop.f32.mrb[5].mxu0 }
 0x2bc   : > { %v1159_v51 = vadd.f32 %v1158_v56, %v549_v45  ;;  %v1160_v52 = vpop.f32.mrb[6].mxu0 }
 0x2bd   : > { %v1161_v57 = vadd.f32 %v1160_v52, %v545_v53  ;;  %v1162_v58 = vpop.f32.mrb[7].mxu0 }
 0x2be   : > { %v1568_v59 = vpack.c.bf16 %v1159_v51, %v1157_v55  ;;  %v1163_v60 = vadd.f32 %v1162_v58, %v549_v45 }
 0x2c0   : > { %1205 = vst [vmem:[%s352_s17] sm:$0xff] %v1568_v59  ;;  %v1569_v28 = vpack.c.bf16 %v1163_v60, %v1161_v57 }
 0x2c2   : > { %1206 = vst [vmem:[%s352_s17 + $0x8] sm:$0xff] %v1569_v28 }
 0x2c3   : > { %1937 = shalt.err (!%p1934_p13)
}
 0x2c4   : > { %s1938_s3 = scalar_lea.hbm %s2391_s18, 256  ;;  %s1942_s30 = scalar_lea.hbm %s2450_s7, 512 }
 0x2c5   : > { %p1939_p6 = scmp.ne.s32.totalorder %s2391_s18, %s1938_s3  ;;  %p1943_p11 = scmp.lt.u32.totalorder %s2391_s18, %s2450_s7 }
 0x2c6   : > { %p1944_p0 = scmp.lt.u32.totalorder %s1942_s30, %s1938_s3  ;;  %p1946_p9 = scmp.lt.u32.totalorder %s1938_s3, %s2391_s18 }
 0x2c7   : > { %p1940_p8 = pnand %p1939_p6, %p2161_p10 }
 0x2c8   : > { %p1945_p5 = por %p1944_p0, %p1943_p11 }
 0x2c9   : > { %p1941_p12 = pneg %p1940_p8 }
 0x2ca   : > { %p1947_p1 = por %p1946_p9, %p1945_p5 }
 0x2cc   : > { %p1948_p2 = pnand %p1947_p1, %p1941_p12 }
 0x2ce   : > { %1951 = shalt.err (!%p1948_p2)
}
 0x2cf   : > { %1581 = dma.vmem_to_hbm [thread:$0]  (%p2161_p10), %s2385_s27, 256, %s2391_s18, %s2326_s19, %s2023_s0, %s2023_s0, %s2024_s11  }
 0x2d0 PF: > { %s1287_s17 = sand.u32 1, %s1994_s24   ;;  %p2475_p3 = scmp.ne.s32.totalorder %s2460_s10, 0 }
 0x2d1   : > { %p2476_p7 = scmp.ge.s32.totalorder %s2014_s29, 2  ;;  %s1288_s20 = scalar_lea.sflag [#allocation4], %s1287_s17 }
 0x2d3   : > { %p1594_p4 = pnand %p2476_p7, %p2475_p3 }
 0x2d5   : > { %1985 = dma.done.wait (!%p1594_p4), %s1288_s20, 256  }
 0x2d6   : > { %1987 = vsyncadd (!%p1594_p4), %s1288_s20, 4294967040  ;;  %s2477_s21 = sadd.s32 4294967294, %s2014_s29  }
 0x2d7   : > { %s1296_s14 = sand.u32 1, %s2477_s21  }
 0x2d8   : > { %s1297_s13 = scalar_lea.sflag [#allocation9], %s1296_s14 }
 0x2d9   : > { %1989 = dma.done.wait (!%p1594_p4), %s1297_s13, 512  }
 0x2da   : > { %1991 = vsyncadd (!%p1594_p4), %s1297_s13, 4294966784  ;;  %s28_s29 = sadd.s32 1, %s2014_s29   ;;  %s2478_s24 = smov %s1998_s25 }
 0x2db   : > { %p25_p10 = scmp.ge.s32.totalorder %s28_s29, 4   ;;  %s2479_s25 = smov %s2002_s26 }
 0x2dc   : > { %s2480_s26 = smov %s2170_s23  ;;  %s2481_s27 = smov %s2010_s28 }
 0x2dd   : > { %s2482_s28 = smov %s2484_s15  ;;  %27 = sbr.rel (!%p25_p10) target bundleno = 14 (0xe), region = 121 }
 0x2e4   :  { %1311 = vsyncpa [#allocation3], 1 }
 0x2e5   :  { %1313 = vsyncpa [#allocation3 + $0x1], 1 }
 0x2e6   :  { %1314 = vsyncpa [#allocation6], 1 }
 0x2e7   :  { %1315 = vsyncpa [#allocation4], 1 }
 0x2e8   :  { %1317 = vsyncpa [#allocation4 + $0x1], 1 }
 0x2e9   :  { %1318 = vsyncpa [#allocation9], 1 }
 0x2ea   :  { %1320 = vsyncpa [#allocation9 + $0x1], 1 }

</bundles_post_ra>
